<compile_context>
chip_gen: v7x
topology: tpu7x:2x2x1
jax: 0.10.0
libtpu: 0.0.40
codegen_flags: <defaults>
</compile_context>

<pallas_src>
import jax
import jax.numpy as jnp
from jax.experimental import pallas as pl
from jax.experimental.pallas import tpu as pltpu

# ---- dimensions --------------------------------------------------------------
B, C_IN, H_IMG, W_IMG = 2, 3, 16, 16           # example input images (NCHW)
FLAT = C_IN * H_IMG * W_IMG                    # 768 (multiple of 128)
FEAT = 512                                     # CLIP feature dim
NUM_CLASSES = 14                               # len(words)
HID1, HID2 = 256, 128                          # torchvision.ops.MLP hidden dims
OUT_PAD = 128                                  # lane-dense padded class dim
TILE_B = 8                                     # batch rows per grid step (>= 8)
EPS = 1e-12


def event_model_kernel(img_ref, wimg_ref, bimg_ref,
                       wf_ref, b1_ref, w2_ref, b2_ref, w3_ref, b3_ref,
                       out_ref):
    # ---- encode_image stand-in: linear projection of flattened pixels -> 512-d
    # TODO(synk): the pretrained CLIP ViT-B/32 image transformer has no clean
    # Pallas equivalent without a checkpoint; represented by one projection.
    x = img_ref[...]                                                  # bf16 [T, 768]
    img_feat = (jnp.dot(x, wimg_ref[...],
                        preferred_element_type=jnp.float32)
                + bimg_ref[...])                                      # f32 [T, 512]

    # ---- L2-normalize image features (f32, eps-guarded)
    inv_n = jax.lax.rsqrt(
        jnp.sum(img_feat * img_feat, axis=-1, keepdims=True) + EPS)
    img_n = (img_feat * inv_n).astype(jnp.bfloat16)                   # [T, 512]

    # ---- combine_text + first MLP layer, folded:
    # (img_n @ l2norm(text).T) @ w1 + b1  ==  img_n @ W_fused + b1
    h1 = jnp.maximum(
        jnp.dot(img_n, wf_ref[...], preferred_element_type=jnp.float32)
        + b1_ref[...], 0.0)                                           # [T, 256]
    h2 = jnp.maximum(
        jnp.dot(h1.astype(jnp.bfloat16), w2_ref[...],
                preferred_element_type=jnp.float32)
        + b2_ref[...], 0.0)                                           # [T, 128]
    # ---- final Linear (dropout p=0 is identity at inference); padded to 128 lanes
    out_ref[...] = (
        jnp.dot(h2.astype(jnp.bfloat16), w3_ref[...],
                preferred_element_type=jnp.float32)
        + b3_ref[...])                                                # [T, 128]


def event_model_forward(images, params):
    """images: [B, 3, H, W] float32 (NCHW).  Returns [B, NUM_CLASSES] float32."""
    b = images.shape[0]
    x = images.reshape(b, -1).astype(jnp.float32)          # flatten NCHW row-major
    b_pad = ((b + TILE_B - 1) // TILE_B) * TILE_B
    x = jnp.pad(x, ((0, b_pad - b), (0, 0))).astype(jnp.bfloat16)

    grid = (b_pad // TILE_B,)

    def resident(shape):
        # Full-array block, same block index every grid step -> stays VMEM resident.
        return pl.BlockSpec(shape, lambda i: (0, 0))

    in_specs = [
        pl.BlockSpec((TILE_B, FLAT), lambda i: (i, 0)),     # image tile (pipelined)
        resident((FLAT, FEAT)),                             # w_img   (bf16)
        resident((1, FEAT)),                                # b_img   (f32)
        resident((FEAT, HID1)),                             # W_fused (bf16)
        resident((1, HID1)),                                # b1      (f32)
        resident((HID1, HID2)),                             # w2      (bf16)
        resident((1, HID2)),                                # b2      (f32)
        resident((HID2, OUT_PAD)),                          # w3 pad  (bf16)
        resident((1, OUT_PAD)),                             # b3 pad  (f32)
    ]

    out = pl.pallas_call(
        event_model_kernel,
        out_shape=jax.ShapeDtypeStruct((b_pad, OUT_PAD), jnp.float32),
        grid=grid,
        in_specs=in_specs,
        out_specs=pl.BlockSpec((TILE_B, OUT_PAD), lambda i: (i, 0)),
        compiler_params=pltpu.CompilerParams(
            dimension_semantics=("parallel",)),             # shards across v7x's 2 TCs
    )(x,
      params["w_img"], params["b_img"],
      params["w_fused"], params["b1"],
      params["w2"], params["b2"],
      params["w3p"], params["b3p"])

    return out[:b, :NUM_CLASSES]


def init_params(key):
    ks = jax.random.split(key, 8)
    # encode_image stand-in
    w_img = 0.02 * jax.random.normal(ks[0], (FLAT, FEAT), jnp.float32)
    b_img = jnp.zeros((1, FEAT), jnp.float32)
    # encode_text(self.text) is a constant at inference (fixed prompts);
    # TODO(synk): pretrained CLIP text transformer replaced by a fixed table.
    text_features = jax.random.normal(ks[1], (NUM_CLASSES, FEAT), jnp.float32)
    # torchvision.ops.MLP(NUM_CLASSES, [256, 128, NUM_CLASSES])
    w1 = 0.1 * jax.random.normal(ks[2], (NUM_CLASSES, HID1), jnp.float32)
    b1 = 0.01 * jax.random.normal(ks[3], (1, HID1), jnp.float32)
    w2 = 0.1 * jax.random.normal(ks[4], (HID1, HID2), jnp.float32)
    b2 = 0.01 * jax.random.normal(ks[5], (1, HID2), jnp.float32)
    w3 = 0.1 * jax.random.normal(ks[6], (HID2, NUM_CLASSES), jnp.float32)
    b3 = 0.01 * jax.random.normal(ks[7], (1, NUM_CLASSES), jnp.float32)

    # ---- inference-time constant folding (done once, outside the kernel) ----
    # Pre-normalize text features and fold them into the first MLP layer:
    txt_n = text_features * jax.lax.rsqrt(
        jnp.sum(text_features * text_features, axis=-1, keepdims=True) + EPS)
    w_fused = txt_n.T @ w1                                  # [512, 256]

    # Pad the 14-wide final layer to a lane-dense 128-wide output.
    w3p = jnp.zeros((HID2, OUT_PAD), jnp.float32).at[:, :NUM_CLASSES].set(w3)
    b3p = jnp.zeros((1, OUT_PAD), jnp.float32).at[:, :NUM_CLASSES].set(b3)

    return {
        "w_img": w_img.astype(jnp.bfloat16),
        "b_img": b_img,
        "w_fused": w_fused.astype(jnp.bfloat16),
        "b1": b1,
        "w2": w2.astype(jnp.bfloat16),
        "b2": b2,
        "w3p": w3p.astype(jnp.bfloat16),
        "b3p": b3p,
    }


if __name__ == "__main__":
    key = jax.random.PRNGKey(0)
    k_img, k_par = jax.random.split(key)

    images = jax.random.normal(k_img, (B, C_IN, H_IMG, W_IMG), jnp.float32)
    params = init_params(k_par)

    out = event_model_forward(images, params)
    out = jax.block_until_ready(out)

    assert out.shape == (B, NUM_CLASSES), out.shape
    assert out.dtype == jnp.float32
    assert bool(jnp.all(jnp.isfinite(out)))
    print("KERNEL_OK")
</pallas_src>

<mosaic_0001>
module attributes {stable_mosaic.version = 11 : i64} {
  func.func @event_model_kernel(%arg0: i32, %arg1: memref<8x768xbf16, #tpu.memory_space<vmem>>, %arg2: memref<768x512xbf16, #tpu.memory_space<vmem>>, %arg3: memref<1x512xf32, #tpu.memory_space<vmem>>, %arg4: memref<512x256xbf16, #tpu.memory_space<vmem>>, %arg5: memref<1x256xf32, #tpu.memory_space<vmem>>, %arg6: memref<256x128xbf16, #tpu.memory_space<vmem>>, %arg7: memref<1x128xf32, #tpu.memory_space<vmem>>, %arg8: memref<128x128xbf16, #tpu.memory_space<vmem>>, %arg9: memref<1x128xf32, #tpu.memory_space<vmem>>, %arg10: memref<8x128xf32, #tpu.memory_space<vmem>>) attributes {dimension_semantics = [#tpu.dimension_semantics<parallel>], iteration_bounds = array<i64: 1>, scalar_prefetch = 0 : i64, scratch_operands = 0 : i64, tpu.core_type = #tpu.core_type<tc>, window_params = [{transform_indices = @transform_0, window_bounds = array<i64: 8, 768>}, {pipeline_mode = #tpu.pipeline_mode<synchronous>, transform_indices = @transform_1, window_bounds = array<i64: 768, 512>}, {pipeline_mode = #tpu.pipeline_mode<synchronous>, transform_indices = @transform_2, window_bounds = array<i64: 1, 512>}, {pipeline_mode = #tpu.pipeline_mode<synchronous>, transform_indices = @transform_3, window_bounds = array<i64: 512, 256>}, {pipeline_mode = #tpu.pipeline_mode<synchronous>, transform_indices = @transform_4, window_bounds = array<i64: 1, 256>}, {pipeline_mode = #tpu.pipeline_mode<synchronous>, transform_indices = @transform_5, window_bounds = array<i64: 256, 128>}, {pipeline_mode = #tpu.pipeline_mode<synchronous>, transform_indices = @transform_6, window_bounds = array<i64: 1, 128>}, {pipeline_mode = #tpu.pipeline_mode<synchronous>, transform_indices = @transform_7, window_bounds = array<i64: 128, 128>}, {pipeline_mode = #tpu.pipeline_mode<synchronous>, transform_indices = @transform_8, window_bounds = array<i64: 1, 128>}, {transform_indices = @transform_9, window_bounds = array<i64: 8, 128>}]} {
    %c0 = arith.constant 0 : index
    %c0_0 = arith.constant 0 : index
    %0 = vector.load %arg1[%c0, %c0_0] : memref<8x768xbf16, #tpu.memory_space<vmem>>, vector<8x768xbf16>
    %c0_1 = arith.constant 0 : index
    %c0_2 = arith.constant 0 : index
    %1 = vector.load %arg2[%c0_1, %c0_2] : memref<768x512xbf16, #tpu.memory_space<vmem>>, vector<768x512xbf16>
    %cst = arith.constant dense<0.000000e+00> : vector<8x512xf32>
    %2 = tpu.matmul %0, %1, %cst {dimension_numbers = #tpu.dot_dimension_numbers<[1], [0], [0], [1], [0, 0, 1, 1], [], []>} : vector<8x768xbf16>, vector<768x512xbf16>, vector<8x512xf32> -> vector<8x512xf32>
    %c0_3 = arith.constant 0 : index
    %c0_4 = arith.constant 0 : index
    %3 = vector.load %arg3[%c0_3, %c0_4] : memref<1x512xf32, #tpu.memory_space<vmem>>, vector<1x512xf32>
    %4 = vector.broadcast %3 : vector<1x512xf32> to vector<8x512xf32>
    %5 = arith.addf %2, %4 : vector<8x512xf32>
    %6 = arith.mulf %5, %5 : vector<8x512xf32>
    %cst_5 = arith.constant dense<0.000000e+00> : vector<8xf32>
    %7 = vector.multi_reduction <add>, %6, %cst_5 [1] : vector<8x512xf32> to vector<8xf32>
    %8 = vector.shape_cast %7 : vector<8xf32> to vector<8x1xf32>
    %cst_6 = arith.constant 9.99999996E-13 : f32
    %9 = vector.broadcast %cst_6 : f32 to vector<8x1xf32>
    %10 = arith.addf %8, %9 : vector<8x1xf32>
    %11 = math.rsqrt %10 : vector<8x1xf32>
    %12 = vector.broadcast %11 : vector<8x1xf32> to vector<8x512xf32>
    %13 = arith.mulf %5, %12 : vector<8x512xf32>
    %14 = arith.truncf %13 : vector<8x512xf32> to vector<8x512xbf16>
    %c0_7 = arith.constant 0 : index
    %c0_8 = arith.constant 0 : index
    %15 = vector.load %arg4[%c0_7, %c0_8] : memref<512x256xbf16, #tpu.memory_space<vmem>>, vector<512x256xbf16>
    %cst_9 = arith.constant dense<0.000000e+00> : vector<8x256xf32>
    %16 = tpu.matmul %14, %15, %cst_9 {dimension_numbers = #tpu.dot_dimension_numbers<[1], [0], [0], [1], [0, 0, 1, 1], [], []>} : vector<8x512xbf16>, vector<512x256xbf16>, vector<8x256xf32> -> vector<8x256xf32>
    %c0_10 = arith.constant 0 : index
    %c0_11 = arith.constant 0 : index
    %17 = vector.load %arg5[%c0_10, %c0_11] : memref<1x256xf32, #tpu.memory_space<vmem>>, vector<1x256xf32>
    %18 = vector.broadcast %17 : vector<1x256xf32> to vector<8x256xf32>
    %19 = arith.addf %16, %18 : vector<8x256xf32>
    %cst_12 = arith.constant 0.000000e+00 : f32
    %20 = vector.broadcast %cst_12 : f32 to vector<8x256xf32>
    %21 = arith.maximumf %19, %20 : vector<8x256xf32>
    %22 = arith.truncf %21 : vector<8x256xf32> to vector<8x256xbf16>
    %c0_13 = arith.constant 0 : index
    %c0_14 = arith.constant 0 : index
    %23 = vector.load %arg6[%c0_13, %c0_14] : memref<256x128xbf16, #tpu.memory_space<vmem>>, vector<256x128xbf16>
    %cst_15 = arith.constant dense<0.000000e+00> : vector<8x128xf32>
    %24 = tpu.matmul %22, %23, %cst_15 {dimension_numbers = #tpu.dot_dimension_numbers<[1], [0], [0], [1], [0, 0, 1, 1], [], []>} : vector<8x256xbf16>, vector<256x128xbf16>, vector<8x128xf32> -> vector<8x128xf32>
    %c0_16 = arith.constant 0 : index
    %c0_17 = arith.constant 0 : index
    %25 = vector.load %arg7[%c0_16, %c0_17] : memref<1x128xf32, #tpu.memory_space<vmem>>, vector<1x128xf32>
    %26 = vector.broadcast %25 : vector<1x128xf32> to vector<8x128xf32>
    %27 = arith.addf %24, %26 : vector<8x128xf32>
    %cst_18 = arith.constant 0.000000e+00 : f32
    %28 = vector.broadcast %cst_18 : f32 to vector<8x128xf32>
    %29 = arith.maximumf %27, %28 : vector<8x128xf32>
    %30 = arith.truncf %29 : vector<8x128xf32> to vector<8x128xbf16>
    %c0_19 = arith.constant 0 : index
    %c0_20 = arith.constant 0 : index
    %31 = vector.load %arg8[%c0_19, %c0_20] : memref<128x128xbf16, #tpu.memory_space<vmem>>, vector<128x128xbf16>
    %cst_21 = arith.constant dense<0.000000e+00> : vector<8x128xf32>
    %32 = tpu.matmul %30, %31, %cst_21 {dimension_numbers = #tpu.dot_dimension_numbers<[1], [0], [0], [1], [0, 0, 1, 1], [], []>} : vector<8x128xbf16>, vector<128x128xbf16>, vector<8x128xf32> -> vector<8x128xf32>
    %c0_22 = arith.constant 0 : index
    %c0_23 = arith.constant 0 : index
    %33 = vector.load %arg9[%c0_22, %c0_23] : memref<1x128xf32, #tpu.memory_space<vmem>>, vector<1x128xf32>
    %34 = vector.broadcast %33 : vector<1x128xf32> to vector<8x128xf32>
    %35 = arith.addf %32, %34 : vector<8x128xf32>
    %c0_24 = arith.constant 0 : index
    %c0_25 = arith.constant 0 : index
    %36 = vector.load %arg10[%c0_24, %c0_25] : memref<8x128xf32, #tpu.memory_space<vmem>>, vector<8x128xf32>
    tpu.vector_store %arg10[%c0_24, %c0_25], %35 {strides = array<i32>} : memref<8x128xf32, #tpu.memory_space<vmem>>, vector<8x128xf32>,
    return
  }
  func.func @transform_0(%arg0: i32) -> (i32, i32) {
    %c0_i32 = arith.constant 0 : i32
    %c0_i32_0 = arith.constant 0 : i32
    return %arg0, %c0_i32 : i32, i32
  }
  func.func @transform_1(%arg0: i32) -> (i32, i32) {
    %c0_i32 = arith.constant 0 : i32
    %c0_i32_0 = arith.constant 0 : i32
    %c0_i32_1 = arith.constant 0 : i32
    return %c0_i32, %c0_i32_0 : i32, i32
  }
  func.func @transform_2(%arg0: i32) -> (i32, i32) {
    %c0_i32 = arith.constant 0 : i32
    %c0_i32_0 = arith.constant 0 : i32
    %c0_i32_1 = arith.constant 0 : i32
    return %c0_i32, %c0_i32_0 : i32, i32
  }
  func.func @transform_3(%arg0: i32) -> (i32, i32) {
    %c0_i32 = arith.constant 0 : i32
    %c0_i32_0 = arith.constant 0 : i32
    %c0_i32_1 = arith.constant 0 : i32
    return %c0_i32, %c0_i32_0 : i32, i32
  }
  func.func @transform_4(%arg0: i32) -> (i32, i32) {
    %c0_i32 = arith.constant 0 : i32
    %c0_i32_0 = arith.constant 0 : i32
    %c0_i32_1 = arith.constant 0 : i32
    return %c0_i32, %c0_i32_0 : i32, i32
  }
  func.func @transform_5(%arg0: i32) -> (i32, i32) {
    %c0_i32 = arith.constant 0 : i32
    %c0_i32_0 = arith.constant 0 : i32
    %c0_i32_1 = arith.constant 0 : i32
    return %c0_i32, %c0_i32_0 : i32, i32
  }
  func.func @transform_6(%arg0: i32) -> (i32, i32) {
    %c0_i32 = arith.constant 0 : i32
    %c0_i32_0 = arith.constant 0 : i32
    %c0_i32_1 = arith.constant 0 : i32
    return %c0_i32, %c0_i32_0 : i32, i32
  }
  func.func @transform_7(%arg0: i32) -> (i32, i32) {
    %c0_i32 = arith.constant 0 : i32
    %c0_i32_0 = arith.constant 0 : i32
    %c0_i32_1 = arith.constant 0 : i32
    return %c0_i32, %c0_i32_0 : i32, i32
  }
  func.func @transform_8(%arg0: i32) -> (i32, i32) {
    %c0_i32 = arith.constant 0 : i32
    %c0_i32_0 = arith.constant 0 : i32
    %c0_i32_1 = arith.constant 0 : i32
    return %c0_i32, %c0_i32_0 : i32, i32
  }
  func.func @transform_9(%arg0: i32) -> (i32, i32) {
    %c0_i32 = arith.constant 0 : i32
    %c0_i32_0 = arith.constant 0 : i32
    return %arg0, %c0_i32 : i32, i32
  }
}

</mosaic_0001>

<bundles_post_ra>
// kernel: tpu_custom_call.1
= control target key start
LH: loop header
LB: loop body
LE: loop exit
PB: predicated region body
PF: predicated region fallthrough
CT: control target
= control target key end

     0   :  { %14 = vsyncpa [#allocation3], 0  ;;  %s3489_s0 = inlined_call_operand.hbm [shape: bf16[8,768], index: 0, kind: input, shape index: {}]   ;;  %s3490_s1 = inlined_call_operand.hbm [shape: bf16[768,512], index: 1, kind: input, shape index: {}]   ;;  %s3491_s2 = inlined_call_operand.vmem [shape: f32[1,512], index: 2, kind: input, shape index: {}]   ;;  %s3492_s3 = inlined_call_operand.hbm [shape: bf16[512,256], index: 3, kind: input, shape index: {}]   ;;  %s3493_s4 = inlined_call_operand.vmem [shape: f32[1,256], index: 4, kind: input, shape index: {}]   ;;  %s3494_s5 = inlined_call_operand.hbm [shape: bf16[256,128], index: 5, kind: input, shape index: {}]   ;;  %s3495_s6 = inlined_call_operand.vmem [shape: f32[1,128], index: 6, kind: input, shape index: {}]   ;;  %s3496_s7 = inlined_call_operand.hbm [shape: bf16[128,128], index: 7, kind: input, shape index: {}]   ;;  %s3497_s8 = inlined_call_operand.vmem [shape: f32[1,128], index: 8, kind: input, shape index: {}]   ;;  %s3498_s9 = inlined_call_operand.hbm [shape: f32[8,128], index: 9, kind: output, shape index: {}]  }
   0x1   :  { %15 = vsyncpa [#allocation6], 0 }
   0x2   :  { %16 = vsyncpa [#allocation9], 0 }
   0x3   :  { %17 = vsyncpa [#allocation4], 0  ;;  %s3286_s30 = smov [#allocation5]   ;;  %s3146_s13 = scalar_lea.hbm %s3490_s1, 24576 }
   0x4   :  { %s33_s10 = sshll.u32 %s3286_s30, 4  ;;  %p3147_p0 = scmp.ne.s32.totalorder %s3490_s1, %s3146_s13  ;;  %s34_s10 = int_to_ptr.vmem [resolvable:$true] %s33_s10 }
   0x5   :  { %p3150_p1 = scmp.lt.u32.totalorder %s3146_s13, %s3490_s1 }
   0x7   :  { %p3152_p2 = pnand %p3150_p1, %p3147_p0 }
   0x9   :  { %3155 = shalt.err (!%p3152_p2)
}
   0xa   :  { %s3156_s18 = scalar_lea.vmem %s34_s10, 24576  ;;  %p3161_p4 = scmp.lt.s32.totalorder %s34_s10, %s34_s10 }
   0xb   :  { %p3157_p3 = scmp.ne.s32.totalorder %s34_s10, %s3156_s18  ;;  %p3162_p5 = scmp.lt.s32.totalorder %s3156_s18, %s3156_s18 }
   0xd   :  { %p3163_p6 = por %p3162_p5, %p3161_p4 }
   0xf   :  { %p3164_p7 = pnand %p3163_p6, %p3157_p3 }
  0x11   :  { %3167 = shalt.err (!%p3164_p7)
}
  0x12   :  { %s3287_s19 = smov 256   ;;  %s3288_s20 = smov 16  }
  0x13   :  { %39 = dma.hbm_to_vmem [thread:$0]  %s3490_s1, 24576, %s34_s10, [#allocation6], %s3287_s19, %s3287_s19, %s3288_s20  }
  0x14   :  { %s3289_s23 = smov [#allocation8]   ;;  %s3168_s27 = scalar_lea.hbm %s3494_s5, 2048 }
  0x15   :  { %s61_s24 = sshll.u32 %s3289_s23, 4  ;;  %p3169_p8 = scmp.ne.s32.totalorder %s3494_s5, %s3168_s27  ;;  %s62_s24 = int_to_ptr.vmem [resolvable:$true] %s61_s24 }
  0x16   :  { %p3172_p9 = scmp.lt.u32.totalorder %s3168_s27, %s3494_s5 }
  0x18   :  { %p3174_p10 = pnand %p3172_p9, %p3169_p8 }
  0x1a   :  { %3177 = shalt.err (!%p3174_p10)
}
  0x1b   :  { %s3178_s12 = scalar_lea.vmem %s62_s24, 2048  ;;  %p3183_p12 = scmp.lt.s32.totalorder %s62_s24, %s62_s24 }
  0x1c   :  { %p3179_p11 = scmp.ne.s32.totalorder %s62_s24, %s3178_s12  ;;  %p3184_p13 = scmp.lt.s32.totalorder %s3178_s12, %s3178_s12 }
  0x1e   :  { %p3185_p0 = por %p3184_p13, %p3183_p12 }
  0x20   :  { %p3186_p1 = pnand %p3185_p0, %p3179_p11 }
  0x22   :  { %3189 = shalt.err (!%p3186_p1)
}
  0x23   :  { %s3290_s1 = smov 64   ;;  %s3291_s10 = smov 4  }
  0x24   :  { %67 = dma.hbm_to_vmem [thread:$0]  %s3494_s5, 2048, %s62_s24, [#allocation9], %s3290_s1, %s3290_s1, %s3291_s10  }
  0x25   :  { %s3292_s15 = smov [#allocation2]   ;;  %s3293_s17 = smov [#allocation7]  }
  0x26   :  { %s24_s16 = sshll.u32 %s3292_s15, 4  ;;  %s47_s18 = sshll.u32 %s3293_s17, 4  ;;  %s25_s16 = int_to_ptr.vmem [resolvable:$true] %s24_s16  ;;  %s3377_s18 = int_to_ptr.vmem [resolvable:$true] %s47_s18 }
  0x27   :  { %s3190_s21 = scalar_lea.hbm %s3489_s0, 384 }
  0x28   :  { %p3191_p2 = scmp.ne.s32.totalorder %s3489_s0, %s3190_s21  ;;  %p3194_p3 = scmp.lt.u32.totalorder %s3190_s21, %s3489_s0 }
  0x2a   :  { %p3196_p4 = pnand %p3194_p3, %p3191_p2 }
  0x2c   :  { %3199 = shalt.err (!%p3196_p4)
}
  0x2d   :  { %s3200_s5 = scalar_lea.vmem %s25_s16, 384  ;;  %p3205_p6 = scmp.lt.s32.totalorder %s25_s16, %s25_s16 }
  0x2e   :  { %p3201_p5 = scmp.ne.s32.totalorder %s25_s16, %s3200_s5  ;;  %p3206_p7 = scmp.lt.s32.totalorder %s3200_s5, %s3200_s5 }
  0x30   :  { %p3207_p8 = por %p3206_p7, %p3205_p6 }
  0x32   :  { %p3208_p9 = pnand %p3207_p8, %p3201_p5 }
  0x34   :  { %3211 = shalt.err (!%p3208_p9)
}
  0x35   :  { %27 = dma.hbm_to_vmem [thread:$0]  %s3489_s0, 384, %s25_s16, [#allocation3]  }
  0x36   :  { %s3212_s30 = scalar_lea.hbm %s3492_s3, 8192 }
  0x37   :  { %p3213_p10 = scmp.ne.s32.totalorder %s3492_s3, %s3212_s30  ;;  %p3216_p11 = scmp.lt.u32.totalorder %s3212_s30, %s3492_s3 }
  0x39   :  { %p3218_p12 = pnand %p3216_p11, %p3213_p10 }
  0x3b   :  { %3221 = shalt.err (!%p3218_p12)
}
  0x3c   :  { %s3222_s15 = scalar_lea.vmem %s3377_s18, 8192  ;;  %p3227_p0 = scmp.lt.s32.totalorder %s3377_s18, %s3377_s18 }
  0x3d   :  { %p3223_p13 = scmp.ne.s32.totalorder %s3377_s18, %s3222_s15  ;;  %p3228_p1 = scmp.lt.s32.totalorder %s3222_s15, %s3222_s15 }
  0x3f   :  { %p3229_p2 = por %p3228_p1, %p3227_p0 }
  0x41   :  { %p3230_p3 = pnand %p3229_p2, %p3223_p13 }
  0x43   :  { %3233 = shalt.err (!%p3230_p3)
}
  0x44   :  { %s3294_s0 = smov 128   ;;  %s3295_s16 = smov 8  }
  0x45   :  { %53 = dma.hbm_to_vmem [thread:$0]  %s3492_s3, 8192, %s3377_s18, [#allocation6], %s3294_s0, %s3294_s0, %s3295_s16  }
  0x46   :  { %s3296_s20 = smov [#allocation10]   ;;  %s3234_s25 = scalar_lea.hbm %s3496_s7, 1024 }
  0x47   :  { %s75_s21 = sshll.u32 %s3296_s20, 4  ;;  %p3235_p4 = scmp.ne.s32.totalorder %s3496_s7, %s3234_s25  ;;  %s76_s21 = int_to_ptr.vmem [resolvable:$true] %s75_s21 }
  0x48   :  { %p3238_p5 = scmp.lt.u32.totalorder %s3234_s25, %s3496_s7 }
  0x4a   :  { %p3240_p6 = pnand %p3238_p5, %p3235_p4 }
  0x4c   :  { %3243 = shalt.err (!%p3240_p6)
}
  0x4d   :  { %s3244_s28 = scalar_lea.vmem %s76_s21, 1024  ;;  %p3249_p8 = scmp.lt.s32.totalorder %s76_s21, %s76_s21 }
  0x4e   :  { %p3245_p7 = scmp.ne.s32.totalorder %s76_s21, %s3244_s28  ;;  %p3250_p9 = scmp.lt.s32.totalorder %s3244_s28, %s3244_s28 }
  0x50   :  { %p3251_p10 = por %p3250_p9, %p3249_p8 }
  0x52   :  { %p3252_p11 = pnand %p3251_p10, %p3245_p7 }
  0x54   :  { %3255 = shalt.err (!%p3252_p11)
}
  0x55   :  { %81 = dma.hbm_to_vmem [thread:$0]  %s3496_s7, 1024, %s76_s21, [#allocation9], %s3290_s1, %s3290_s1, %s3291_s10  }
  0x56   :  { %3278 = dma.done.wait [#allocation3], 384  }
  0x57   :  { %3279 = vsyncadd [#allocation3], 4294966912 }
  0x58   :  { %3280 = dma.done.wait [#allocation6], 32768  }
  0x59   :  { %3281 = vsyncadd [#allocation6], 4294934528 }
  0x5a   :  { %3282 = dma.done.wait [#allocation9], 3072  }
  0x5b   :  { %3283 = vsyncadd [#allocation9], 4294964224  ;;  %v2730_v0 = vld [vmem:[#allocation5 + $0x4] ss:$16 sps:$4 sm:$0xff]   ;;  %v2732_v1 = vld [vmem:[#allocation5 + $0xc] ss:$16 sps:$4 sm:$0xff]  }
  0x5c   :  { %1298 = vmatprep.subr.bf16.mxu0 %v2730_v0  ;;  %v2734_v2 = vld [vmem:[#allocation5] ss:$16 sps:$4 sm:$0xff]   ;;  %v2735_v3 = vld [vmem:[#allocation5 + $0x8] ss:$16 sps:$4 sm:$0xff]   ;;  %1421 = vmatprep.subr.bf16.mxu1 %v2732_v1  ;;  %v2736_v4 = vld [vmem:[#allocation5 + $0x24] ss:$16 sps:$4 sm:$0xff]  }
  0x5d   :  { %1299 = vmatpush1.bf16.msra.mxu0 %v2734_v2  ;;  %1422 = vmatpush1.bf16.msra.mxu1 %v2735_v3  ;;  %v2738_v5 = vld [vmem:[#allocation5 + $0x2c] ss:$16 sps:$4 sm:$0xff]   ;;  %v2740_v6 = vld [vmem:[#allocation5 + $0x20] ss:$16 sps:$4 sm:$0xff]   ;;  %v2741_v7 = vld [vmem:[#allocation5 + $0x28] ss:$16 sps:$4 sm:$0xff]  }
  0x5e   :  { %1300 = vmatprep.subr.bf16.mxu0 %v2736_v4  ;;  %1423 = vmatprep.subr.bf16.mxu1 %v2738_v5  ;;  %v2742_v8 = vld [vmem:[#allocation5 + $0x44] ss:$16 sps:$4 sm:$0xff]   ;;  %v2744_v9 = vld [vmem:[#allocation5 + $0x4c] ss:$16 sps:$4 sm:$0xff]   ;;  %v2746_v10 = vld [vmem:[#allocation5 + $0x40] ss:$16 sps:$4 sm:$0xff]  }
  0x5f   :  { %v2747_v11 = vld [vmem:[#allocation5 + $0x48] ss:$16 sps:$4 sm:$0xff]   ;;  %v2748_v12 = vld [vmem:[#allocation5 + $0x64] ss:$16 sps:$4 sm:$0xff]   ;;  %v2750_v13 = vld [vmem:[#allocation5 + $0x6c] ss:$16 sps:$4 sm:$0xff]  }
  0x60   :  { %v2752_v14 = vld [vmem:[#allocation5 + $0x60] ss:$16 sps:$4 sm:$0xff]   ;;  %v2753_v15 = vld [vmem:[#allocation5 + $0x68] ss:$16 sps:$4 sm:$0xff]   ;;  %v2754_v16 = vld [vmem:[#allocation5 + $0x84] ss:$16 sps:$4 sm:$0xff]  }
  0x61   :  { %1301 = vmatpush1.bf16.msra.mxu0 %v2740_v6  ;;  %1424 = vmatpush1.bf16.msra.mxu1 %v2741_v7  ;;  %v2756_v17 = vld [vmem:[#allocation5 + $0x8c] ss:$16 sps:$4 sm:$0xff]   ;;  %v2758_v18 = vld [vmem:[#allocation5 + $0x80] ss:$16 sps:$4 sm:$0xff]   ;;  %v2759_v19 = vld [vmem:[#allocation5 + $0x88] ss:$16 sps:$4 sm:$0xff]  }
  0x62   :  { %1302 = vmatprep.subr.bf16.mxu0 %v2742_v8  ;;  %1425 = vmatprep.subr.bf16.mxu1 %v2744_v9  ;;  %v2760_v20 = vld [vmem:[#allocation5 + $0xa4] ss:$16 sps:$4 sm:$0xff]   ;;  %v2762_v21 = vld [vmem:[#allocation5 + $0xac] ss:$16 sps:$4 sm:$0xff]   ;;  %v2764_v22 = vld [vmem:[#allocation5 + $0xa0] ss:$16 sps:$4 sm:$0xff]  }
  0x63   :  { %v2765_v23 = vld [vmem:[#allocation5 + $0xa8] ss:$16 sps:$4 sm:$0xff]   ;;  %v2766_v24 = vld [vmem:[#allocation5 + $0xc4] ss:$16 sps:$4 sm:$0xff]   ;;  %v2768_v25 = vld [vmem:[#allocation5 + $0xcc] ss:$16 sps:$4 sm:$0xff]  }
  0x64   :  { %v2770_v26 = vld [vmem:[#allocation5 + $0xc0] ss:$16 sps:$4 sm:$0xff]   ;;  %v2771_v27 = vld [vmem:[#allocation5 + $0xc8] ss:$16 sps:$4 sm:$0xff]   ;;  %v2772_v28 = vld [vmem:[#allocation5 + $0xe4] ss:$16 sps:$4 sm:$0xff]  }
  0x65   :  { %1303 = vmatpush1.bf16.msra.mxu0 %v2746_v10  ;;  %1426 = vmatpush1.bf16.msra.mxu1 %v2747_v11  ;;  %v2774_v29 = vld [vmem:[#allocation5 + $0xec] ss:$16 sps:$4 sm:$0xff]   ;;  %v2776_v30 = vld [vmem:[#allocation5 + $0xe0] ss:$16 sps:$4 sm:$0xff]   ;;  %v2777_v31 = vld [vmem:[#allocation5 + $0xe8] ss:$16 sps:$4 sm:$0xff]  }
  0x66   :  { %1304 = vmatprep.subr.bf16.mxu0 %v2748_v12  ;;  %1427 = vmatprep.subr.bf16.mxu1 %v2750_v13  ;;  %v2778_v32 = vld [vmem:[#allocation5 + $0x104] ss:$16 sps:$4 sm:$0xff]   ;;  %v2780_v33 = vld [vmem:[#allocation5 + $0x10c] ss:$16 sps:$4 sm:$0xff]   ;;  %v2782_v34 = vld [vmem:[#allocation5 + $0x100] ss:$16 sps:$4 sm:$0xff]  }
  0x67   :  { %v2783_v35 = vld [vmem:[#allocation5 + $0x108] ss:$16 sps:$4 sm:$0xff]   ;;  %v2784_v36 = vld [vmem:[#allocation5 + $0x124] ss:$16 sps:$4 sm:$0xff]   ;;  %v2786_v37 = vld [vmem:[#allocation5 + $0x12c] ss:$16 sps:$4 sm:$0xff]  }
  0x68   :  { %v2788_v38 = vld [vmem:[#allocation5 + $0x120] ss:$16 sps:$4 sm:$0xff]   ;;  %v2789_v39 = vld [vmem:[#allocation5 + $0x128] ss:$16 sps:$4 sm:$0xff]   ;;  %v2790_v40 = vld [vmem:[#allocation5 + $0x144] ss:$16 sps:$4 sm:$0xff]  }
  0x69   :  { %1305 = vmatpush1.bf16.msra.mxu0 %v2752_v14  ;;  %1428 = vmatpush1.bf16.msra.mxu1 %v2753_v15  ;;  %v2792_v41 = vld [vmem:[#allocation5 + $0x14c] ss:$16 sps:$4 sm:$0xff]   ;;  %v2794_v42 = vld [vmem:[#allocation5 + $0x140] ss:$16 sps:$4 sm:$0xff]   ;;  %v2795_v43 = vld [vmem:[#allocation5 + $0x148] ss:$16 sps:$4 sm:$0xff]  }
  0x6a   :  { %1306 = vmatprep.subr.bf16.mxu0 %v2754_v16  ;;  %1429 = vmatprep.subr.bf16.mxu1 %v2756_v17  ;;  %v2796_v44 = vld [vmem:[#allocation5 + $0x164] ss:$16 sps:$4 sm:$0xff]   ;;  %v2798_v45 = vld [vmem:[#allocation5 + $0x16c] ss:$16 sps:$4 sm:$0xff]   ;;  %v2800_v47 = vld [vmem:[#allocation5 + $0x160] ss:$16 sps:$4 sm:$0xff]  }
  0x6b   :  { %v100_v46 = vld [vmem:[#allocation2] sm:$0xff]  ;;  %v2802_v50 = vld [vmem:[#allocation5 + $0x184] ss:$16 sps:$4 sm:$0xff]   ;;  %v2806_v52 = vld [vmem:[#allocation5 + $0x180] ss:$16 sps:$4 sm:$0xff]   ;;  %vm3298_vm0 = vmmov 0  }
  0x6c   :  { %v2352_v48 = vcombine.high %v100_v46, %v100_v46  ;;  %v2801_v49 = vld [vmem:[#allocation5 + $0x168] ss:$16 sps:$4 sm:$0xff]   ;;  %v2804_v51 = vld [vmem:[#allocation5 + $0x18c] ss:$16 sps:$4 sm:$0xff]   ;;  %v2808_v54 = vld [vmem:[#allocation5 + $0x1a4] ss:$16 sps:$4 sm:$0xff]   ;;  %v2351_v4 = vcombine.low %v100_v46, %v100_v46 }
  0x6d   :  { %1307 = vmatpush1.bf16.msra.mxu0 %v2758_v18  ;;  %1430 = vmatpush1.bf16.msra.mxu1 %v2759_v19  ;;  %v2807_v53 = vld [vmem:[#allocation5 + $0x188] ss:$16 sps:$4 sm:$0xff]   ;;  %v2810_v55 = vld [vmem:[#allocation5 + $0x1ac] ss:$16 sps:$4 sm:$0xff]   ;;  %v2812_v56 = vld [vmem:[#allocation5 + $0x1a0] ss:$16 sps:$4 sm:$0xff]  }
  0x6e   :  { %1308 = vmatprep.subr.bf16.mxu0 %v2760_v20  ;;  %1431 = vmatprep.subr.bf16.mxu1 %v2762_v21  ;;  %v2813_v57 = vld [vmem:[#allocation5 + $0x1a8] ss:$16 sps:$4 sm:$0xff]   ;;  %v2814_v58 = vld [vmem:[#allocation5 + $0x1c4] ss:$16 sps:$4 sm:$0xff]   ;;  %v2816_v59 = vld [vmem:[#allocation5 + $0x1cc] ss:$16 sps:$4 sm:$0xff]  }
  0x6f   :  { %1330 = vmatprep.mubr.bf16.mxu0 %v2352_v48  ;;  %1453 = vmatprep.mubr.bf16.mxu1 %v2352_v48  ;;  %v2818_v60 = vld [vmem:[#allocation5 + $0x1c0] ss:$16 sps:$4 sm:$0xff]   ;;  %v2819_v61 = vld [vmem:[#allocation5 + $0x1c8] ss:$16 sps:$4 sm:$0xff]   ;;  %v2820_v62 = vld [vmem:[#allocation5 + $0x1e4] ss:$16 sps:$4 sm:$0xff]  }
  0x70   :  { %v2822_v63 = vld [vmem:[#allocation5 + $0x1ec] ss:$16 sps:$4 sm:$0xff]   ;;  %v2824_v0 = vld [vmem:[#allocation5 + $0x1e0] ss:$16 sps:$4 sm:$0xff]   ;;  %v2825_v1 = vld [vmem:[#allocation5 + $0x1e8] ss:$16 sps:$4 sm:$0xff]  }
  0x71   :  { %1309 = vmatpush1.bf16.msra.mxu0 %v2764_v22  ;;  %1432 = vmatpush1.bf16.msra.mxu1 %v2765_v23  ;;  %v2830_v2 = vld [vmem:[#allocation5 + $0x204] ss:$16 sps:$4 sm:$0xff]   ;;  %v2833_v3 = vld [vmem:[#allocation5 + $0x20c] ss:$16 sps:$4 sm:$0xff]   ;;  %v2828_v5 = vld [vmem:[#allocation5 + $0x200] ss:$16 sps:$4 sm:$0xff]  }
  0x72   :  { %1310 = vmatprep.subr.bf16.mxu0 %v2766_v24  ;;  %1433 = vmatprep.subr.bf16.mxu1 %v2768_v25  ;;  %v2831_v6 = vld [vmem:[#allocation5 + $0x208] ss:$16 sps:$4 sm:$0xff]   ;;  %v2836_v7 = vld [vmem:[#allocation5 + $0x224] ss:$16 sps:$4 sm:$0xff]   ;;  %v2839_v8 = vld [vmem:[#allocation5 + $0x22c] ss:$16 sps:$4 sm:$0xff]  }
  0x73   :  { %v2834_v9 = vld [vmem:[#allocation5 + $0x220] ss:$16 sps:$4 sm:$0xff]   ;;  %v2837_v10 = vld [vmem:[#allocation5 + $0x228] ss:$16 sps:$4 sm:$0xff]   ;;  %v2842_v11 = vld [vmem:[#allocation5 + $0x244] ss:$16 sps:$4 sm:$0xff]  }
  0x74   :  { %v2845_v12 = vld [vmem:[#allocation5 + $0x24c] ss:$16 sps:$4 sm:$0xff]   ;;  %v2840_v13 = vld [vmem:[#allocation5 + $0x240] ss:$16 sps:$4 sm:$0xff]   ;;  %v2843_v14 = vld [vmem:[#allocation5 + $0x248] ss:$16 sps:$4 sm:$0xff]  }
  0x75   :  { %1311 = vmatpush1.bf16.msra.mxu0 %v2770_v26  ;;  %1434 = vmatpush1.bf16.msra.mxu1 %v2771_v27  ;;  %v2848_v15 = vld [vmem:[#allocation5 + $0x264] ss:$16 sps:$4 sm:$0xff]   ;;  %v2851_v16 = vld [vmem:[#allocation5 + $0x26c] ss:$16 sps:$4 sm:$0xff]   ;;  %v2846_v17 = vld [vmem:[#allocation5 + $0x260] ss:$16 sps:$4 sm:$0xff]  }
  0x76   :  { %1312 = vmatprep.subr.bf16.mxu0 %v2772_v28  ;;  %1435 = vmatprep.subr.bf16.mxu1 %v2774_v29  ;;  %v2849_v18 = vld [vmem:[#allocation5 + $0x268] ss:$16 sps:$4 sm:$0xff]   ;;  %v2854_v19 = vld [vmem:[#allocation5 + $0x284] ss:$16 sps:$4 sm:$0xff]   ;;  %v2857_v20 = vld [vmem:[#allocation5 + $0x28c] ss:$16 sps:$4 sm:$0xff]  }
  0x77   :  { %v2852_v21 = vld [vmem:[#allocation5 + $0x280] ss:$16 sps:$4 sm:$0xff]   ;;  %v2855_v22 = vld [vmem:[#allocation5 + $0x288] ss:$16 sps:$4 sm:$0xff]   ;;  %v2860_v23 = vld [vmem:[#allocation5 + $0x2a4] ss:$16 sps:$4 sm:$0xff]  }
  0x78   :  { %v2863_v24 = vld [vmem:[#allocation5 + $0x2ac] ss:$16 sps:$4 sm:$0xff]   ;;  %v2858_v25 = vld [vmem:[#allocation5 + $0x2a0] ss:$16 sps:$4 sm:$0xff]   ;;  %v2861_v26 = vld [vmem:[#allocation5 + $0x2a8] ss:$16 sps:$4 sm:$0xff]  }
  0x79   :  { %1313 = vmatpush1.bf16.msra.mxu0 %v2776_v30  ;;  %1436 = vmatpush1.bf16.msra.mxu1 %v2777_v31  ;;  %v2866_v27 = vld [vmem:[#allocation5 + $0x2c4] ss:$16 sps:$4 sm:$0xff]   ;;  %v2869_v28 = vld [vmem:[#allocation5 + $0x2cc] ss:$16 sps:$4 sm:$0xff]   ;;  %v2864_v31 = vld [vmem:[#allocation5 + $0x2c0] ss:$16 sps:$4 sm:$0xff]  }
  0x7a   :  { %1314 = vmatprep.subr.bf16.mxu0 %v2778_v32  ;;  %1437 = vmatprep.subr.bf16.mxu1 %v2780_v33  ;;  %v3423_v29 = vld [vmem:[#allocation2 + $0x8] sm:$0xff]  ;;  %v2867_v32 = vld [vmem:[#allocation5 + $0x2c8] ss:$16 sps:$4 sm:$0xff]   ;;  %v2893_v46 = vld [vmem:[#allocation5 + $0x34c] ss:$16 sps:$4 sm:$0xff]   ;;  %s3299_s12 = smov [#allocation11]  }
  0x7b   :  { %v2354_v30 = vcombine.high %v3423_v29, %v3423_v29  ;;  %v2872_v33 = vld [vmem:[#allocation5 + $0x2e4] ss:$16 sps:$4 sm:$0xff]   ;;  %v2891_v48 = vld [vmem:[#allocation5 + $0x348] ss:$16 sps:$4 sm:$0xff]   ;;  %s2340_s13 = sshll.u32 %s3299_s12, 4  ;;  %s2341_s13 = int_to_ptr.vmem [resolvable:$true] %s2340_s13 }
  0x7c   :  { %p3261_p13 = scmp.lt.s32.totalorder %s2341_s13, %s2341_s13 }
  0x7d   :  { %1315 = vmatpush1.bf16.msra.mxu0 %v2782_v34  ;;  %1438 = vmatpush1.bf16.msra.mxu1 %v2783_v35  ;;  %v2875_v34 = vld [vmem:[#allocation5 + $0x2ec] ss:$16 sps:$4 sm:$0xff]   ;;  %v2870_v35 = vld [vmem:[#allocation5 + $0x2e0] ss:$16 sps:$4 sm:$0xff]  }
  0x7e   :  { %1316 = vmatprep.subr.bf16.mxu0 %v2784_v36  ;;  %1439 = vmatprep.subr.bf16.mxu1 %v2786_v37  ;;  %v2873_v36 = vld [vmem:[#allocation5 + $0x2e8] ss:$16 sps:$4 sm:$0xff]   ;;  %v2878_v37 = vld [vmem:[#allocation5 + $0x304] ss:$16 sps:$4 sm:$0xff]  }
  0x81   :  { %1317 = vmatpush1.bf16.msra.mxu0 %v2788_v38  ;;  %1440 = vmatpush1.bf16.msra.mxu1 %v2789_v39  ;;  %v2881_v38 = vld [vmem:[#allocation5 + $0x30c] ss:$16 sps:$4 sm:$0xff]   ;;  %v2876_v39 = vld [vmem:[#allocation5 + $0x300] ss:$16 sps:$4 sm:$0xff]  }
  0x82   :  { %1318 = vmatprep.subr.bf16.mxu0 %v2790_v40  ;;  %1441 = vmatprep.subr.bf16.mxu1 %v2792_v41  ;;  %v2879_v40 = vld [vmem:[#allocation5 + $0x308] ss:$16 sps:$4 sm:$0xff]   ;;  %v2884_v41 = vld [vmem:[#allocation5 + $0x324] ss:$16 sps:$4 sm:$0xff]  }
  0x85   :  { %1319 = vmatpush1.bf16.msra.mxu0 %v2794_v42  ;;  %1442 = vmatpush1.bf16.msra.mxu1 %v2795_v43  ;;  %v2887_v42 = vld [vmem:[#allocation5 + $0x32c] ss:$16 sps:$4 sm:$0xff]   ;;  %v2882_v43 = vld [vmem:[#allocation5 + $0x320] ss:$16 sps:$4 sm:$0xff]  }
  0x86   :  { %1320 = vmatprep.subr.bf16.mxu0 %v2796_v44  ;;  %1443 = vmatprep.subr.bf16.mxu1 %v2798_v45  ;;  %v2885_v44 = vld [vmem:[#allocation5 + $0x328] ss:$16 sps:$4 sm:$0xff]   ;;  %v2890_v45 = vld [vmem:[#allocation5 + $0x344] ss:$16 sps:$4 sm:$0xff]  }
  0x89   :  { %1321 = vmatpush1.bf16.msra.mxu0 %v2800_v47  ;;  %1444 = vmatpush1.bf16.msra.mxu1 %v2801_v49  ;;  %v2888_v47 = vld [vmem:[#allocation5 + $0x340] ss:$16 sps:$4 sm:$0xff]   ;;  %v2896_v49 = vld [vmem:[#allocation5 + $0x364] ss:$16 sps:$4 sm:$0xff]  }
  0x8a   :  { %1322 = vmatprep.subr.bf16.mxu0 %v2802_v50  ;;  %1445 = vmatprep.subr.bf16.mxu1 %v2804_v51  ;;  %v2899_v50 = vld [vmem:[#allocation5 + $0x36c] ss:$16 sps:$4 sm:$0xff]   ;;  %v2894_v51 = vld [vmem:[#allocation5 + $0x360] ss:$16 sps:$4 sm:$0xff]  }
  0x8d   :  { %1323 = vmatpush1.bf16.msra.mxu0 %v2806_v52  ;;  %1446 = vmatpush1.bf16.msra.mxu1 %v2807_v53  ;;  %v2897_v52 = vld [vmem:[#allocation5 + $0x368] ss:$16 sps:$4 sm:$0xff]   ;;  %v2902_v53 = vld [vmem:[#allocation5 + $0x384] ss:$16 sps:$4 sm:$0xff]  }
  0x8e   :  { %1324 = vmatprep.subr.bf16.mxu0 %v2808_v54  ;;  %1447 = vmatprep.subr.bf16.mxu1 %v2810_v55  ;;  %v2905_v54 = vld [vmem:[#allocation5 + $0x38c] ss:$16 sps:$4 sm:$0xff]   ;;  %v2900_v55 = vld [vmem:[#allocation5 + $0x380] ss:$16 sps:$4 sm:$0xff]  }
  0x91   :  { %1325 = vmatpush1.bf16.msra.mxu0 %v2812_v56  ;;  %1448 = vmatpush1.bf16.msra.mxu1 %v2813_v57  ;;  %v2903_v56 = vld [vmem:[#allocation5 + $0x388] ss:$16 sps:$4 sm:$0xff]   ;;  %v2908_v57 = vld [vmem:[#allocation5 + $0x3a4] ss:$16 sps:$4 sm:$0xff]  }
  0x92   :  { %1326 = vmatprep.subr.bf16.mxu0 %v2814_v58  ;;  %1449 = vmatprep.subr.bf16.mxu1 %v2816_v59  ;;  %v2911_v58 = vld [vmem:[#allocation5 + $0x3ac] ss:$16 sps:$4 sm:$0xff]   ;;  %v2906_v59 = vld [vmem:[#allocation5 + $0x3a0] ss:$16 sps:$4 sm:$0xff]  }
  0x95   :  { %1327 = vmatpush1.bf16.msra.mxu0 %v2818_v60  ;;  %1450 = vmatpush1.bf16.msra.mxu1 %v2819_v61  ;;  %v2909_v60 = vld [vmem:[#allocation5 + $0x3a8] ss:$16 sps:$4 sm:$0xff]   ;;  %v2914_v61 = vld [vmem:[#allocation5 + $0x3c4] ss:$16 sps:$4 sm:$0xff]  }
  0x96   :  { %1328 = vmatprep.subr.bf16.mxu0 %v2820_v62  ;;  %1451 = vmatprep.subr.bf16.mxu1 %v2822_v63  ;;  %v2917_v62 = vld [vmem:[#allocation5 + $0x3cc] ss:$16 sps:$4 sm:$0xff]   ;;  %v2912_v63 = vld [vmem:[#allocation5 + $0x3c0] ss:$16 sps:$4 sm:$0xff]  }
  0x99   :  { %1329 = vmatpush1.bf16.msra.mxu0 %v2824_v0  ;;  %1452 = vmatpush1.bf16.msra.mxu1 %v2825_v1  ;;  %v2915_v0 = vld [vmem:[#allocation5 + $0x3c8] ss:$16 sps:$4 sm:$0xff]   ;;  %v2920_v1 = vld [vmem:[#allocation5 + $0x3e4] ss:$16 sps:$4 sm:$0xff]  }
  0x9a   :  { %1339 = vmatprep.subr.bf16.mxu0 %v2830_v2  ;;  %1462 = vmatprep.subr.bf16.mxu1 %v2833_v3  ;;  %v2923_v2 = vld [vmem:[#allocation5 + $0x3ec] ss:$16 sps:$4 sm:$0xff]   ;;  %v2918_v3 = vld [vmem:[#allocation5 + $0x3e0] ss:$16 sps:$4 sm:$0xff]  }
  0x9c   :  { %1331 = vmatmul.mubr.bf16.vlgmr.msra.gmra.mrb[0].mxu0 %v2351_v4  ;;  %1454 = vmatmul.mubr.bf16.vlgmr.msra.gmra.mrb[0].mxu1 %v2351_v4  ;;  %v2921_v4 = vld [vmem:[#allocation5 + $0x3e8] ss:$16 sps:$4 sm:$0xff]  }
  0x9d   :  { %1340 = vmatpush1.bf16.msra.mxu0 %v2828_v5  ;;  %1463 = vmatpush1.bf16.msra.mxu1 %v2831_v6  ;;  %v2928_v5 = vld [vmem:[#allocation5 + $0x404] ss:$16 sps:$4 sm:$0xff]   ;;  %v2931_v6 = vld [vmem:[#allocation5 + $0x40c] ss:$16 sps:$4 sm:$0xff]  }
  0x9e   :  { %1341 = vmatprep.subr.bf16.mxu0 %v2836_v7  ;;  %1464 = vmatprep.subr.bf16.mxu1 %v2839_v8  ;;  %v2353_v7 = vcombine.low %v3423_v29, %v3423_v29  ;;  %v2926_v8 = vld [vmem:[#allocation5 + $0x400] ss:$16 sps:$4 sm:$0xff]   ;;  %v2961_v29 = vld [vmem:[#allocation5 + $0x4ac] ss:$16 sps:$4 sm:$0xff]  }
  0x9f   :  { %1371 = vmatprep.mubr.bf16.mxu0 %v2354_v30  ;;  %1494 = vmatprep.mubr.bf16.mxu1 %v2354_v30  ;;  %v2956_v30 = vld [vmem:[#allocation5 + $0x4a0] ss:$16 sps:$4 sm:$0xff]  }
  0xa1   :  { %1342 = vmatpush1.bf16.msra.mxu0 %v2834_v9  ;;  %1465 = vmatpush1.bf16.msra.mxu1 %v2837_v10  ;;  %v2929_v9 = vld [vmem:[#allocation5 + $0x408] ss:$16 sps:$4 sm:$0xff]   ;;  %v2934_v10 = vld [vmem:[#allocation5 + $0x424] ss:$16 sps:$4 sm:$0xff]  }
  0xa2   :  { %1343 = vmatprep.subr.bf16.mxu0 %v2842_v11  ;;  %1466 = vmatprep.subr.bf16.mxu1 %v2845_v12  ;;  %v3429_v11 = vld [vmem:[#allocation2 + $0x10] sm:$0xff] }
  0xa3   :  { %v2937_v12 = vld [vmem:[#allocation5 + $0x42c] ss:$16 sps:$4 sm:$0xff]  }
  0xa5   :  { %1344 = vmatpush1.bf16.msra.mxu0 %v2840_v13  ;;  %1467 = vmatpush1.bf16.msra.mxu1 %v2843_v14  ;;  %v2932_v13 = vld [vmem:[#allocation5 + $0x420] ss:$16 sps:$4 sm:$0xff]   ;;  %v2935_v14 = vld [vmem:[#allocation5 + $0x428] ss:$16 sps:$4 sm:$0xff]  }
  0xa6   :  { %1345 = vmatprep.subr.bf16.mxu0 %v2848_v15  ;;  %1468 = vmatprep.subr.bf16.mxu1 %v2851_v16  ;;  %v2356_v15 = vcombine.high %v3429_v11, %v3429_v11  ;;  %v2940_v16 = vld [vmem:[#allocation5 + $0x444] ss:$16 sps:$4 sm:$0xff]  }
  0xa9   :  { %1346 = vmatpush1.bf16.msra.mxu0 %v2846_v17  ;;  %1469 = vmatpush1.bf16.msra.mxu1 %v2849_v18  ;;  %v2943_v17 = vld [vmem:[#allocation5 + $0x44c] ss:$16 sps:$4 sm:$0xff]   ;;  %v2938_v18 = vld [vmem:[#allocation5 + $0x440] ss:$16 sps:$4 sm:$0xff]  }
  0xaa   :  { %1347 = vmatprep.subr.bf16.mxu0 %v2854_v19  ;;  %1470 = vmatprep.subr.bf16.mxu1 %v2857_v20  ;;  %v2941_v19 = vld [vmem:[#allocation5 + $0x448] ss:$16 sps:$4 sm:$0xff]   ;;  %v2946_v20 = vld [vmem:[#allocation5 + $0x464] ss:$16 sps:$4 sm:$0xff]  }
  0xad   :  { %1348 = vmatpush1.bf16.msra.mxu0 %v2852_v21  ;;  %1471 = vmatpush1.bf16.msra.mxu1 %v2855_v22  ;;  %v2949_v21 = vld [vmem:[#allocation5 + $0x46c] ss:$16 sps:$4 sm:$0xff]   ;;  %v2944_v22 = vld [vmem:[#allocation5 + $0x460] ss:$16 sps:$4 sm:$0xff]  }
  0xae   :  { %1349 = vmatprep.subr.bf16.mxu0 %v2860_v23  ;;  %1472 = vmatprep.subr.bf16.mxu1 %v2863_v24  ;;  %v2947_v23 = vld [vmem:[#allocation5 + $0x468] ss:$16 sps:$4 sm:$0xff]   ;;  %v2952_v24 = vld [vmem:[#allocation5 + $0x484] ss:$16 sps:$4 sm:$0xff]  }
  0xb1   :  { %1350 = vmatpush1.bf16.msra.mxu0 %v2858_v25  ;;  %1473 = vmatpush1.bf16.msra.mxu1 %v2861_v26  ;;  %v2955_v25 = vld [vmem:[#allocation5 + $0x48c] ss:$16 sps:$4 sm:$0xff]   ;;  %v2950_v26 = vld [vmem:[#allocation5 + $0x480] ss:$16 sps:$4 sm:$0xff]  }
  0xb2   :  { %1351 = vmatprep.subr.bf16.mxu0 %v2866_v27  ;;  %1474 = vmatprep.subr.bf16.mxu1 %v2869_v28  ;;  %v2953_v27 = vld [vmem:[#allocation5 + $0x488] ss:$16 sps:$4 sm:$0xff]   ;;  %v2958_v28 = vld [vmem:[#allocation5 + $0x4a4] ss:$16 sps:$4 sm:$0xff]  }
  0xb5   :  { %1352 = vmatpush1.bf16.msra.mxu0 %v2864_v31  ;;  %1475 = vmatpush1.bf16.msra.mxu1 %v2867_v32  ;;  %v2959_v31 = vld [vmem:[#allocation5 + $0x4a8] ss:$16 sps:$4 sm:$0xff]   ;;  %v2964_v32 = vld [vmem:[#allocation5 + $0x4c4] ss:$16 sps:$4 sm:$0xff]  }
  0xb6   :  { %1353 = vmatprep.subr.bf16.mxu0 %v2872_v33  ;;  %1476 = vmatprep.subr.bf16.mxu1 %v2875_v34  ;;  %v2967_v33 = vld [vmem:[#allocation5 + $0x4cc] ss:$16 sps:$4 sm:$0xff]   ;;  %v2962_v34 = vld [vmem:[#allocation5 + $0x4c0] ss:$16 sps:$4 sm:$0xff]  }
  0xb9   :  { %1354 = vmatpush1.bf16.msra.mxu0 %v2870_v35  ;;  %1477 = vmatpush1.bf16.msra.mxu1 %v2873_v36  ;;  %v2965_v35 = vld [vmem:[#allocation5 + $0x4c8] ss:$16 sps:$4 sm:$0xff]   ;;  %v2970_v36 = vld [vmem:[#allocation5 + $0x4e4] ss:$16 sps:$4 sm:$0xff]  }
  0xba   :  { %1355 = vmatprep.subr.bf16.mxu0 %v2878_v37  ;;  %1478 = vmatprep.subr.bf16.mxu1 %v2881_v38  ;;  %v2973_v37 = vld [vmem:[#allocation5 + $0x4ec] ss:$16 sps:$4 sm:$0xff]   ;;  %v2968_v38 = vld [vmem:[#allocation5 + $0x4e0] ss:$16 sps:$4 sm:$0xff]  }
  0xbd   :  { %1356 = vmatpush1.bf16.msra.mxu0 %v2876_v39  ;;  %1479 = vmatpush1.bf16.msra.mxu1 %v2879_v40  ;;  %v2971_v39 = vld [vmem:[#allocation5 + $0x4e8] ss:$16 sps:$4 sm:$0xff]   ;;  %v2976_v40 = vld [vmem:[#allocation5 + $0x504] ss:$16 sps:$4 sm:$0xff]  }
  0xbe   :  { %1357 = vmatprep.subr.bf16.mxu0 %v2884_v41  ;;  %1480 = vmatprep.subr.bf16.mxu1 %v2887_v42  ;;  %v2979_v41 = vld [vmem:[#allocation5 + $0x50c] ss:$16 sps:$4 sm:$0xff]   ;;  %v2974_v42 = vld [vmem:[#allocation5 + $0x500] ss:$16 sps:$4 sm:$0xff]  }
  0xc1   :  { %1358 = vmatpush1.bf16.msra.mxu0 %v2882_v43  ;;  %1481 = vmatpush1.bf16.msra.mxu1 %v2885_v44  ;;  %v2977_v43 = vld [vmem:[#allocation5 + $0x508] ss:$16 sps:$4 sm:$0xff]   ;;  %v2982_v44 = vld [vmem:[#allocation5 + $0x524] ss:$16 sps:$4 sm:$0xff]  }
  0xc2   :  { %1359 = vmatprep.subr.bf16.mxu0 %v2890_v45  ;;  %1482 = vmatprep.subr.bf16.mxu1 %v2893_v46  ;;  %v2985_v45 = vld [vmem:[#allocation5 + $0x52c] ss:$16 sps:$4 sm:$0xff]   ;;  %v2980_v46 = vld [vmem:[#allocation5 + $0x520] ss:$16 sps:$4 sm:$0xff]  }
  0xc5   :  { %1360 = vmatpush1.bf16.msra.mxu0 %v2888_v47  ;;  %1483 = vmatpush1.bf16.msra.mxu1 %v2891_v48  ;;  %v2983_v47 = vld [vmem:[#allocation5 + $0x528] ss:$16 sps:$4 sm:$0xff]   ;;  %v2988_v48 = vld [vmem:[#allocation5 + $0x544] ss:$16 sps:$4 sm:$0xff]  }
  0xc6   :  { %1361 = vmatprep.subr.bf16.mxu0 %v2896_v49  ;;  %1484 = vmatprep.subr.bf16.mxu1 %v2899_v50  ;;  %v2991_v49 = vld [vmem:[#allocation5 + $0x54c] ss:$16 sps:$4 sm:$0xff]   ;;  %v2986_v50 = vld [vmem:[#allocation5 + $0x540] ss:$16 sps:$4 sm:$0xff]  }
  0xc9   :  { %1362 = vmatpush1.bf16.msra.mxu0 %v2894_v51  ;;  %1485 = vmatpush1.bf16.msra.mxu1 %v2897_v52  ;;  %v2989_v51 = vld [vmem:[#allocation5 + $0x548] ss:$16 sps:$4 sm:$0xff]   ;;  %v2994_v52 = vld [vmem:[#allocation5 + $0x564] ss:$16 sps:$4 sm:$0xff]  }
  0xca   :  { %1363 = vmatprep.subr.bf16.mxu0 %v2902_v53  ;;  %1486 = vmatprep.subr.bf16.mxu1 %v2905_v54  ;;  %v2997_v53 = vld [vmem:[#allocation5 + $0x56c] ss:$16 sps:$4 sm:$0xff]   ;;  %v2992_v54 = vld [vmem:[#allocation5 + $0x560] ss:$16 sps:$4 sm:$0xff]  }
  0xcd   :  { %1364 = vmatpush1.bf16.msra.mxu0 %v2900_v55  ;;  %1487 = vmatpush1.bf16.msra.mxu1 %v2903_v56  ;;  %v2995_v55 = vld [vmem:[#allocation5 + $0x568] ss:$16 sps:$4 sm:$0xff]   ;;  %v3000_v56 = vld [vmem:[#allocation5 + $0x584] ss:$16 sps:$4 sm:$0xff]  }
  0xce   :  { %1365 = vmatprep.subr.bf16.mxu0 %v2908_v57  ;;  %1488 = vmatprep.subr.bf16.mxu1 %v2911_v58  ;;  %v3003_v57 = vld [vmem:[#allocation5 + $0x58c] ss:$16 sps:$4 sm:$0xff]   ;;  %v2998_v58 = vld [vmem:[#allocation5 + $0x580] ss:$16 sps:$4 sm:$0xff]  }
  0xd1   :  { %1366 = vmatpush1.bf16.msra.mxu0 %v2906_v59  ;;  %1489 = vmatpush1.bf16.msra.mxu1 %v2909_v60  ;;  %v3001_v59 = vld [vmem:[#allocation5 + $0x588] ss:$16 sps:$4 sm:$0xff]   ;;  %v3006_v60 = vld [vmem:[#allocation5 + $0x5a4] ss:$16 sps:$4 sm:$0xff]  }
  0xd2   :  { %1367 = vmatprep.subr.bf16.mxu0 %v2914_v61  ;;  %1490 = vmatprep.subr.bf16.mxu1 %v2917_v62  ;;  %v3009_v61 = vld [vmem:[#allocation5 + $0x5ac] ss:$16 sps:$4 sm:$0xff]   ;;  %v3004_v62 = vld [vmem:[#allocation5 + $0x5a0] ss:$16 sps:$4 sm:$0xff]  }
  0xd5   :  { %1368 = vmatpush1.bf16.msra.mxu0 %v2912_v63  ;;  %1491 = vmatpush1.bf16.msra.mxu1 %v2915_v0  ;;  %v3007_v63 = vld [vmem:[#allocation5 + $0x5a8] ss:$16 sps:$4 sm:$0xff]   ;;  %v3012_v0 = vld [vmem:[#allocation5 + $0x5c4] ss:$16 sps:$4 sm:$0xff]  }
  0xd6   :  { %1369 = vmatprep.subr.bf16.mxu0 %v2920_v1  ;;  %1492 = vmatprep.subr.bf16.mxu1 %v2923_v2  ;;  %v3015_v1 = vld [vmem:[#allocation5 + $0x5cc] ss:$16 sps:$4 sm:$0xff]   ;;  %v3010_v2 = vld [vmem:[#allocation5 + $0x5c0] ss:$16 sps:$4 sm:$0xff]  }
  0xd9   :  { %1370 = vmatpush1.bf16.msra.mxu0 %v2918_v3  ;;  %1493 = vmatpush1.bf16.msra.mxu1 %v2921_v4  ;;  %v3013_v3 = vld [vmem:[#allocation5 + $0x5c8] ss:$16 sps:$4 sm:$0xff]   ;;  %v3018_v4 = vld [vmem:[#allocation5 + $0x5e4] ss:$16 sps:$4 sm:$0xff]  }
  0xda   :  { %1380 = vmatprep.subr.bf16.mxu0 %v2928_v5  ;;  %1503 = vmatprep.subr.bf16.mxu1 %v2931_v6  ;;  %v3021_v5 = vld [vmem:[#allocation5 + $0x5ec] ss:$16 sps:$4 sm:$0xff]   ;;  %v3016_v6 = vld [vmem:[#allocation5 + $0x5e0] ss:$16 sps:$4 sm:$0xff]  }
  0xdc   :  { %1372 = vmatmul.mubr.bf16.vlgmr.msra.gmra.mrb[0].mxu0 %v2353_v7  ;;  %1495 = vmatmul.mubr.bf16.vlgmr.msra.gmra.mrb[0].mxu1 %v2353_v7  ;;  %v3019_v7 = vld [vmem:[#allocation5 + $0x5e8] ss:$16 sps:$4 sm:$0xff]  }
  0xdd   :  { %1381 = vmatpush1.bf16.msra.mxu0 %v2926_v8  ;;  %1504 = vmatpush1.bf16.msra.mxu1 %v2929_v9  ;;  %v2355_v8 = vcombine.low %v3429_v11, %v3429_v11  ;;  %v3024_v9 = vld [vmem:[#allocation7] ss:$8 sps:$4 sm:$0xff]   ;;  %v3038_v11 = vld [vmem:[#allocation7 + $0x44] ss:$8 sps:$4 sm:$0xff]  }
  0xde   :  { %1382 = vmatprep.subr.bf16.mxu0 %v2934_v10  ;;  %1505 = vmatprep.subr.bf16.mxu1 %v2937_v12  ;;  %v3026_v10 = vld [vmem:[#allocation7 + $0x4] ss:$8 sps:$4 sm:$0xff]   ;;  %v3029_v12 = vld [vmem:[#allocation7 + $0x14] ss:$8 sps:$4 sm:$0xff]  }
  0xdf   :  { %1412 = vmatprep.mubr.bf16.mxu0 %v2356_v15  ;;  %1535 = vmatprep.mubr.bf16.mxu1 %v2356_v15  ;;  %v3030_v15 = vld [vmem:[#allocation7 + $0x20] ss:$8 sps:$4 sm:$0xff]  }
  0xe1   :  { %1383 = vmatpush1.bf16.msra.mxu0 %v2932_v13  ;;  %1506 = vmatpush1.bf16.msra.mxu1 %v2935_v14  ;;  %v3027_v13 = vld [vmem:[#allocation7 + $0x10] ss:$8 sps:$4 sm:$0xff]   ;;  %v3032_v14 = vld [vmem:[#allocation7 + $0x24] ss:$8 sps:$4 sm:$0xff]  }
  0xe2   :  { %1384 = vmatprep.subr.bf16.mxu0 %v2940_v16  ;;  %1507 = vmatprep.subr.bf16.mxu1 %v2943_v17  ;;  %v3035_v16 = vld [vmem:[#allocation7 + $0x34] ss:$8 sps:$4 sm:$0xff]   ;;  %v3033_v17 = vld [vmem:[#allocation7 + $0x30] ss:$8 sps:$4 sm:$0xff]  }
  0xe5   :  { %1385 = vmatpush1.bf16.msra.mxu0 %v2938_v18  ;;  %1508 = vmatpush1.bf16.msra.mxu1 %v2941_v19  ;;  %v3036_v18 = vld [vmem:[#allocation7 + $0x40] ss:$8 sps:$4 sm:$0xff]   ;;  %v3041_v19 = vld [vmem:[#allocation7 + $0x54] ss:$8 sps:$4 sm:$0xff]  }
  0xe6   :  { %1386 = vmatprep.subr.bf16.mxu0 %v2946_v20  ;;  %1509 = vmatprep.subr.bf16.mxu1 %v2949_v21  ;;  %v3039_v20 = vld [vmem:[#allocation7 + $0x50] ss:$8 sps:$4 sm:$0xff]   ;;  %v3044_v21 = vld [vmem:[#allocation7 + $0x64] ss:$8 sps:$4 sm:$0xff]  }
  0xe9   :  { %1387 = vmatpush1.bf16.msra.mxu0 %v2944_v22  ;;  %1510 = vmatpush1.bf16.msra.mxu1 %v2947_v23  ;;  %v3042_v22 = vld [vmem:[#allocation7 + $0x60] ss:$8 sps:$4 sm:$0xff]   ;;  %v3047_v23 = vld [vmem:[#allocation7 + $0x74] ss:$8 sps:$4 sm:$0xff]  }
  0xea   :  { %1388 = vmatprep.subr.bf16.mxu0 %v2952_v24  ;;  %1511 = vmatprep.subr.bf16.mxu1 %v2955_v25  ;;  %v3045_v24 = vld [vmem:[#allocation7 + $0x70] ss:$8 sps:$4 sm:$0xff]   ;;  %v3050_v25 = vld [vmem:[#allocation7 + $0x84] ss:$8 sps:$4 sm:$0xff]  }
  0xed   :  { %1389 = vmatpush1.bf16.msra.mxu0 %v2950_v26  ;;  %1512 = vmatpush1.bf16.msra.mxu1 %v2953_v27  ;;  %v3048_v26 = vld [vmem:[#allocation7 + $0x80] ss:$8 sps:$4 sm:$0xff]   ;;  %v3053_v27 = vld [vmem:[#allocation7 + $0x94] ss:$8 sps:$4 sm:$0xff]  }
  0xee   :  { %1390 = vmatprep.subr.bf16.mxu0 %v2958_v28  ;;  %1513 = vmatprep.subr.bf16.mxu1 %v2961_v29  ;;  %v3051_v28 = vld [vmem:[#allocation7 + $0x90] ss:$8 sps:$4 sm:$0xff]   ;;  %v3056_v29 = vld [vmem:[#allocation7 + $0xa4] ss:$8 sps:$4 sm:$0xff]  }
  0xf1   :  { %1391 = vmatpush1.bf16.msra.mxu0 %v2956_v30  ;;  %1514 = vmatpush1.bf16.msra.mxu1 %v2959_v31  ;;  %v3054_v30 = vld [vmem:[#allocation7 + $0xa0] ss:$8 sps:$4 sm:$0xff]   ;;  %v3059_v31 = vld [vmem:[#allocation7 + $0xb4] ss:$8 sps:$4 sm:$0xff]  }
  0xf2   :  { %1392 = vmatprep.subr.bf16.mxu0 %v2964_v32  ;;  %1515 = vmatprep.subr.bf16.mxu1 %v2967_v33  ;;  %v3057_v32 = vld [vmem:[#allocation7 + $0xb0] ss:$8 sps:$4 sm:$0xff]   ;;  %v297_v33 = vlaneseq }
  0xf5   :  { %1393 = vmatpush1.bf16.msra.mxu0 %v2962_v34  ;;  %1516 = vmatpush1.bf16.msra.mxu1 %v2965_v35  ;;  %v3435_v34 = vshrl.u32 %v297_v33, 7  ;;  %v3078_v33 = vld [vmem:[#allocation7 + $0x120] ss:$8 sps:$4 sm:$0xff]  }
  0xf6   :  { %1394 = vmatprep.subr.bf16.mxu0 %v2970_v36  ;;  %1517 = vmatprep.subr.bf16.mxu1 %v2973_v37  ;;  %v295_v36 = vld [vmem:[%s3491_s2] sm:$0xf] }
  0xf7   :  { %v299_v35 = vsub.s32 0, %v3435_v34  ;;  %v307_v37 = vsub.s32 2, %v3435_v34 }
  0xf9   :  { %1395 = vmatpush1.bf16.msra.mxu0 %v2968_v38  ;;  %1518 = vmatpush1.bf16.msra.mxu1 %v2971_v39  ;;  %v303_v38 = vsub.s32 1, %v3435_v34  ;;  %v311_v39 = vsub.s32 3, %v3435_v34  ;;  %v3139_v34 = vld [vmem:[#allocation10 + $0x18] sm:$0xff]  }
  0xfa   :  { %1396 = vmatprep.subr.bf16.mxu0 %v2976_v40  ;;  %1519 = vmatprep.subr.bf16.mxu1 %v2979_v41  ;;  %v300_v40 = vrot.slane %v295_v36, %v299_v35  ;;  %v308_v41 = vrot.slane %v295_v36, %v307_v37  ;;  %v3081_v37 = vld [vmem:[#allocation7 + $0x130] ss:$8 sps:$4 sm:$0xff]  }
  0xfd   :  { %1397 = vmatpush1.bf16.msra.mxu0 %v2974_v42  ;;  %1520 = vmatpush1.bf16.msra.mxu1 %v2977_v43  ;;  %v304_v42 = vrot.slane %v295_v36, %v303_v38 }
  0xfe   :  { %1398 = vmatprep.subr.bf16.mxu0 %v2982_v44  ;;  %1521 = vmatprep.subr.bf16.mxu1 %v2985_v45  ;;  %v312_v45 = vrot.slane %v295_v36, %v311_v39  ;;  %v3083_v36 = vld [vmem:[#allocation7 + $0x134] ss:$8 sps:$4 sm:$0xff]   ;;  %v3086_v39 = vld [vmem:[#allocation7 + $0x144] ss:$8 sps:$4 sm:$0xff]  }
 0x101   :  { %1399 = vmatpush1.bf16.msra.mxu0 %v2980_v46  ;;  %1522 = vmatpush1.bf16.msra.mxu1 %v2983_v47 }
 0x102   :  { %1400 = vmatprep.subr.bf16.mxu0 %v2988_v48  ;;  %1523 = vmatprep.subr.bf16.mxu1 %v2991_v49 }
 0x105   :  { %1401 = vmatpush1.bf16.msra.mxu0 %v2986_v50  ;;  %1524 = vmatpush1.bf16.msra.mxu1 %v2989_v51 }
 0x106   :  { %1402 = vmatprep.subr.bf16.mxu0 %v2994_v52  ;;  %1525 = vmatprep.subr.bf16.mxu1 %v2997_v53 }
 0x109   :  { %1403 = vmatpush1.bf16.msra.mxu0 %v2992_v54  ;;  %1526 = vmatpush1.bf16.msra.mxu1 %v2995_v55 }
 0x10a   :  { %1404 = vmatprep.subr.bf16.mxu0 %v3000_v56  ;;  %1527 = vmatprep.subr.bf16.mxu1 %v3003_v57 }
 0x10d   :  { %1405 = vmatpush1.bf16.msra.mxu0 %v2998_v58  ;;  %1528 = vmatpush1.bf16.msra.mxu1 %v3001_v59 }
 0x10e   :  { %1406 = vmatprep.subr.bf16.mxu0 %v3006_v60  ;;  %1529 = vmatprep.subr.bf16.mxu1 %v3009_v61 }
 0x111   :  { %1407 = vmatpush1.bf16.msra.mxu0 %v3004_v62  ;;  %1530 = vmatpush1.bf16.msra.mxu1 %v3007_v63  ;;  %v3062_v63 = vld [vmem:[#allocation7 + $0xc4] ss:$8 sps:$4 sm:$0xff]  }
 0x112   :  { %1408 = vmatprep.subr.bf16.mxu0 %v3012_v0  ;;  %1531 = vmatprep.subr.bf16.mxu1 %v3015_v1  ;;  %v3060_v0 = vld [vmem:[#allocation7 + $0xc0] ss:$8 sps:$4 sm:$0xff]   ;;  %v3063_v1 = vld [vmem:[#allocation7 + $0xd0] ss:$8 sps:$4 sm:$0xff]  }
 0x115   :  { %1409 = vmatpush1.bf16.msra.mxu0 %v3010_v2  ;;  %1532 = vmatpush1.bf16.msra.mxu1 %v3013_v3  ;;  %v3065_v2 = vld [vmem:[#allocation7 + $0xd4] ss:$8 sps:$4 sm:$0xff]   ;;  %v3068_v3 = vld [vmem:[#allocation7 + $0xe4] ss:$8 sps:$4 sm:$0xff]  }
 0x116   :  { %1410 = vmatprep.subr.bf16.mxu0 %v3018_v4  ;;  %1533 = vmatprep.subr.bf16.mxu1 %v3021_v5  ;;  %v3066_v4 = vld [vmem:[#allocation7 + $0xe0] ss:$8 sps:$4 sm:$0xff]   ;;  %v3071_v5 = vld [vmem:[#allocation7 + $0xf4] ss:$8 sps:$4 sm:$0xff]  }
 0x119   :  { %1411 = vmatpush1.bf16.msra.mxu0 %v3016_v6  ;;  %1534 = vmatpush1.bf16.msra.mxu1 %v3019_v7  ;;  %v3069_v6 = vld [vmem:[#allocation7 + $0xf0] ss:$8 sps:$4 sm:$0xff]   ;;  %v3074_v7 = vld [vmem:[#allocation7 + $0x104] ss:$8 sps:$4 sm:$0xff]  }
 0x11a   :  { %1959 = vmatprep.subr.bf16.mxu0 %v3026_v10  ;;  %v3122_v10 = vld [vmem:[#allocation8 + $0x48] sm:$0xff]  }
 0x11c   :  { %1413 = vmatmul.mubr.bf16.vlgmr.msra.gmra.mrb[0].mxu0 %v2355_v8  ;;  %1536 = vmatmul.mubr.bf16.vlgmr.msra.gmra.mrb[0].mxu1 %v2355_v8  ;;  %v3120_v8 = vld [vmem:[#allocation8 + $0x40] sm:$0xff]  }
 0x11d   :  { %1960 = vmatpush1.bf16.msra.mxu0 %v3024_v9  ;;  %v3121_v9 = vld [vmem:[#allocation8] sm:$0xff]   ;;  %2639 = vmatprep.subr.bf16.mxu1 %v3120_v8 }
 0x11e   :  { %1961 = vmatprep.subr.bf16.mxu0 %v3029_v12  ;;  %2640 = vmatpush3.bf16.msra.mxu1 %v3121_v9  ;;  %v3123_v12 = vld [vmem:[#allocation8 + $0x8] sm:$0xff]  }
 0x11f   :  { %2641 = vmatprep.subr.bf16.mxu1 %v3122_v10 }
 0x121   :  { %1962 = vmatpush1.bf16.msra.mxu0 %v3027_v13  ;;  %v3124_v13 = vld [vmem:[#allocation8 + $0x50] sm:$0xff]  }
 0x122   :  { %1963 = vmatprep.subr.bf16.mxu0 %v3032_v14  ;;  %2642 = vmatpush3.bf16.msra.mxu1 %v3123_v12  ;;  %v3125_v14 = vld [vmem:[#allocation8 + $0x10] sm:$0xff]  }
 0x123   :  { %2643 = vmatprep.subr.bf16.mxu1 %v3124_v13 }
 0x125   :  { %1964 = vmatpush1.bf16.msra.mxu0 %v3030_v15  ;;  %v3126_v15 = vld [vmem:[#allocation8 + $0x58] sm:$0xff]  }
 0x126   :  { %1965 = vmatprep.subr.bf16.mxu0 %v3035_v16  ;;  %2644 = vmatpush3.bf16.msra.mxu1 %v3125_v14  ;;  %v3127_v16 = vld [vmem:[#allocation8 + $0x18] sm:$0xff]  }
 0x127   :  { %2645 = vmatprep.subr.bf16.mxu1 %v3126_v15 }
 0x129   :  { %1966 = vmatpush1.bf16.msra.mxu0 %v3033_v17  ;;  %v3128_v17 = vld [vmem:[#allocation8 + $0x60] sm:$0xff]  }
 0x12a   :  { %1967 = vmatprep.subr.bf16.mxu0 %v3038_v11  ;;  %2646 = vmatpush3.bf16.msra.mxu1 %v3127_v16  ;;  %v3129_v11 = vld [vmem:[#allocation8 + $0x20] sm:$0xff]  }
 0x12b   :  { %2647 = vmatprep.subr.bf16.mxu1 %v3128_v17 }
 0x12d   :  { %1968 = vmatpush1.bf16.msra.mxu0 %v3036_v18  ;;  %v3130_v18 = vld [vmem:[#allocation8 + $0x68] sm:$0xff]  }
 0x12e   :  { %1969 = vmatprep.subr.bf16.mxu0 %v3041_v19  ;;  %2648 = vmatpush3.bf16.msra.mxu1 %v3129_v11  ;;  %v3131_v19 = vld [vmem:[#allocation8 + $0x28] sm:$0xff]  }
 0x12f   :  { %2649 = vmatprep.subr.bf16.mxu1 %v3130_v18  ;;  %v3136_v18 = vld [vmem:[#allocation10] sm:$0xff]  }
 0x131   :  { %1970 = vmatpush1.bf16.msra.mxu0 %v3039_v20 }
 0x132   :  { %1971 = vmatprep.subr.bf16.mxu0 %v3044_v21  ;;  %2650 = vmatpush3.bf16.msra.mxu1 %v3131_v19 }
 0x135   :  { %1972 = vmatpush1.bf16.msra.mxu0 %v3042_v22 }
 0x136   :  { %1973 = vmatprep.subr.bf16.mxu0 %v3047_v23 }
 0x139   :  { %1974 = vmatpush1.bf16.msra.mxu0 %v3045_v24 }
 0x13a   :  { %1975 = vmatprep.subr.bf16.mxu0 %v3050_v25 }
 0x13d   :  { %1976 = vmatpush1.bf16.msra.mxu0 %v3048_v26 }
 0x13e   :  { %1977 = vmatprep.subr.bf16.mxu0 %v3053_v27  ;;  %v3072_v27 = vld [vmem:[#allocation7 + $0x100] ss:$8 sps:$4 sm:$0xff]  }
 0x141   :  { %1978 = vmatpush1.bf16.msra.mxu0 %v3051_v28 }
 0x142   :  { %1979 = vmatprep.subr.bf16.mxu0 %v3056_v29  ;;  %v3077_v29 = vld [vmem:[#allocation7 + $0x114] ss:$8 sps:$4 sm:$0xff]  }
 0x145   :  { %1980 = vmatpush1.bf16.msra.mxu0 %v3054_v30 }
 0x146   :  { %1981 = vmatprep.subr.bf16.mxu0 %v3059_v31  ;;  %v3075_v31 = vld [vmem:[#allocation7 + $0x110] ss:$8 sps:$4 sm:$0xff]  }
 0x149   :  { %1982 = vmatpush1.bf16.msra.mxu0 %v3057_v32  ;;  %v3080_v32 = vld [vmem:[#allocation7 + $0x124] ss:$8 sps:$4 sm:$0xff]  }
 0x14a   :  { %1983 = vmatprep.subr.bf16.mxu0 %v3062_v63  ;;  %v3117_v63 = vld [vmem:[#allocation7 + $0x1f0] ss:$8 sps:$4 sm:$0xff]  }
 0x14d   :  { %1984 = vmatpush1.bf16.msra.mxu0 %v3060_v0 }
 0x14e   :  { %1985 = vmatprep.subr.bf16.mxu0 %v3065_v2  ;;  %v3132_v2 = vld [vmem:[#allocation8 + $0x70] sm:$0xff]  }
 0x14f   :  { %2651 = vmatprep.subr.bf16.mxu1 %v3132_v2 }
 0x151   :  { %1986 = vmatpush1.bf16.msra.mxu0 %v3063_v1 }
 0x152   :  { %1987 = vmatprep.subr.bf16.mxu0 %v3068_v3  ;;  %v3133_v3 = vld [vmem:[#allocation8 + $0x30] sm:$0xff]  }
 0x153   :  { %2652 = vmatpush3.bf16.msra.mxu1 %v3133_v3 }
 0x155   :  { %1988 = vmatpush1.bf16.msra.mxu0 %v3066_v4  ;;  %v3134_v4 = vld [vmem:[#allocation8 + $0x78] sm:$0xff]  }
 0x156   :  { %1989 = vmatprep.subr.bf16.mxu0 %v3071_v5  ;;  %v3135_v5 = vld [vmem:[#allocation8 + $0x38] sm:$0xff]   ;;  %2653 = vmatprep.subr.bf16.mxu1 %v3134_v4 }
 0x157   :  { %2654 = vmatpush3.bf16.msra.mxu1 %v3135_v5 }
 0x159   :  { %1990 = vmatpush1.bf16.msra.mxu0 %v3069_v6  ;;  %v3297_v6 = vmov 0.0  }
 0x15a   :  { %2000 = vmatprep.subr.bf16.mxu0 %v3074_v7  ;;  %2670 = vmatprep.subr.bf16.mxu1 %v3297_v6  ;;  %v1627_v7 = vld [vmem:[%s3493_s4] sm:$0x3] }
 0x15b   :  { %v1636_v8 = vrot.slane %v1627_v7, %v303_v38  ;;  %v3140_v38 = vld [vmem:[#allocation10 + $0x20] sm:$0xff]  }
 0x1ef   :  { %v1414_v43 = vpop.f32.mrb[0].mxu0  ;;  %v1537_v44 = vpop.f32.mrb[0].mxu1 }
 0x1f0   :  { %v3448_v46 = vadd.f32 %v1414_v43, %v300_v40  ;;  %v1416_v47 = vpop.f32.mrb[1].mxu0  ;;  %v1539_v48 = vpop.f32.mrb[1].mxu1  ;;  %v3450_v49 = vadd.f32 %v1537_v44, %v308_v41  ;;  %v3084_v40 = vld [vmem:[#allocation7 + $0x140] ss:$8 sps:$4 sm:$0xff]   ;;  %v3089_v41 = vld [vmem:[#allocation7 + $0x154] ss:$8 sps:$4 sm:$0xff]  }
 0x1f1   :  { %v2691_v50 = vadd.f32 %v1416_v47, %v304_v42  ;;  %v1418_v51 = vpop.f32.mrb[2].mxu0  ;;  %v1541_v52 = vpop.f32.mrb[2].mxu1  ;;  %v2693_v57 = vadd.f32 %v1539_v48, %v312_v45  ;;  %v3087_v42 = vld [vmem:[#allocation7 + $0x150] ss:$8 sps:$4 sm:$0xff]   ;;  %v3092_v43 = vld [vmem:[#allocation7 + $0x164] ss:$8 sps:$4 sm:$0xff]  }
 0x1f2   :  { %v1544_v53 = vmul.f32 %v3448_v46, %v3448_v46  ;;  %v1419_v54 = vpop.f32.mrb[3].mxu0  ;;  %v1542_v55 = vpop.f32.mrb[3].mxu1  ;;  %v1546_v58 = vmul.f32 %v3450_v49, %v3450_v49  ;;  %v3090_v44 = vld [vmem:[#allocation7 + $0x160] ss:$8 sps:$4 sm:$0xff]   ;;  %v3095_v45 = vld [vmem:[#allocation7 + $0x174] ss:$8 sps:$4 sm:$0xff]  }
 0x1f3   :  { %v1545_v56 = vmul.f32 %v2691_v50, %v2691_v50  ;;  %v1547_v60 = vmul.f32 %v2693_v57, %v2693_v57  ;;  %v3098_v47 = vld [vmem:[#allocation7 + $0x184] ss:$8 sps:$4 sm:$0xff]   ;;  %v3096_v48 = vld [vmem:[#allocation7 + $0x180] ss:$8 sps:$4 sm:$0xff]   ;;  %v3099_v51 = vld [vmem:[#allocation7 + $0x190] ss:$8 sps:$4 sm:$0xff]  }
 0x1f4   :  { %v3104_v52 = vld [vmem:[#allocation7 + $0x1a4] ss:$8 sps:$4 sm:$0xff]   ;;  %v3107_v54 = vld [vmem:[#allocation7 + $0x1b4] ss:$8 sps:$4 sm:$0xff]   ;;  %v3105_v55 = vld [vmem:[#allocation7 + $0x1b0] ss:$8 sps:$4 sm:$0xff]  }
 0x1f5   :  { %v1548_v59 = vadd.f32 %v1545_v56, %v1544_v53  ;;  %v3102_v53 = vld [vmem:[#allocation7 + $0x1a0] ss:$8 sps:$4 sm:$0xff]   ;;  %v3110_v56 = vld [vmem:[#allocation7 + $0x1c4] ss:$8 sps:$4 sm:$0xff]  }
 0x1f7   :  { %v1549_v61 = vadd.f32 %v1548_v59, %v1546_v58  ;;  %v3113_v58 = vld [vmem:[#allocation7 + $0x1d4] ss:$8 sps:$4 sm:$0xff]   ;;  %v3111_v59 = vld [vmem:[#allocation7 + $0x1d0] ss:$8 sps:$4 sm:$0xff]  }
 0x1f9   :  { %v1550_v62 = vadd.f32 %v1549_v61, %v1547_v60  ;;  %v3116_v60 = vld [vmem:[#allocation7 + $0x1e4] ss:$8 sps:$4 sm:$0xff]   ;;  %v3114_v61 = vld [vmem:[#allocation7 + $0x1e0] ss:$8 sps:$4 sm:$0xff]  }
 0x1fb   :  { %1551 = vadd.xlane.f32.xlu0 %v1550_v62  ;;  %v3119_v62 = vld [vmem:[#allocation7 + $0x1f4] ss:$8 sps:$4 sm:$0xff]  }
 0x288   :  { %v1552_v20 = vpop.xlane.xlu0 %1551 }
 0x289   :  { %v1553_v21 = vadd.f32 1e-12, %v1552_v20  ;;  %v3137_v20 = vld [vmem:[#allocation10 + $0x8] sm:$0xff]  }
 0x28b   :  { %3144 = vrsqrt.f32 %v1553_v21  ;;  %v3141_v21 = vld [vmem:[#allocation10 + $0x28] sm:$0xff]  }
 0x295   :  { %v3456_v22 = vpop.eup %3144 }
 0x296   :  { %v1556_v23 = vmul.f32 %v3456_v22, %v2691_v50  ;;  %v1555_v24 = vmul.f32 %v3456_v22, %v3448_v46  ;;  %v1558_v25 = vmul.f32 %v3456_v22, %v2693_v57  ;;  %v3093_v46 = vld [vmem:[#allocation7 + $0x170] ss:$8 sps:$4 sm:$0xff]   ;;  %v3101_v50 = vld [vmem:[#allocation7 + $0x194] ss:$8 sps:$4 sm:$0xff]   ;;  %v3108_v57 = vld [vmem:[#allocation7 + $0x1c0] ss:$8 sps:$4 sm:$0xff]   ;;  %v1557_v0 = vmul.f32 %v3456_v22, %v3450_v49 }
 0x297   :  { %v1632_v49 = vrot.slane %v1627_v7, %v299_v35  ;;  %v3138_v35 = vld [vmem:[#allocation10 + $0x10] sm:$0xff]  }
 0x298   :  { %v1560_v26 = vpack.c.bf16 %v1556_v23, %v1556_v23  ;;  %v1559_v28 = vpack.c.bf16 %v1555_v24, %v1555_v24  ;;  %v1562_v30 = vpack.c.bf16 %v1558_v25, %v1558_v25  ;;  %v1561_v1 = vpack.c.bf16 %v1557_v0, %v1557_v0  ;;  %v3142_v22 = vld [vmem:[#allocation10 + $0x30] sm:$0xff]   ;;  %v3143_v23 = vld [vmem:[#allocation10 + $0x38] sm:$0xff]   ;;  %v2613_v25 = vld [vmem:[%s3495_s6] ss:$0 sm:$0xff]  ;;  %s3256_s6 = scalar_lea.vmem %s2341_s13, 128 }
 0x299   :  { %p3257_p12 = scmp.ne.s32.totalorder %s2341_s13, %s3256_s6  ;;  %p3262_p0 = scmp.lt.s32.totalorder %s3256_s6, %s3256_s6 }
 0x29a   :  { %1991 = vmatprep.mubr.bf16.mxu0 %v1560_v26 }
 0x29b   :  { %1992 = vmatmul.mubr.bf16.vlgmr.msra.gmra.mrb[4].mxu0 %v1559_v28  ;;  %p3263_p1 = por %p3262_p0, %p3261_p13 }
 0x29c   :  { %2001 = vmatpush1.bf16.msra.mxu0 %v3072_v27  ;;  %2032 = vmatprep.mubr.bf16.mxu0 %v1562_v30 }
 0x29d   :  { %2002 = vmatprep.subr.bf16.mxu0 %v3077_v29  ;;  %p3264_p2 = pnand %p3263_p1, %p3257_p12 }
 0x2a0   :  { %2003 = vmatpush1.bf16.msra.mxu0 %v3075_v31 }
 0x2a1   :  { %2004 = vmatprep.subr.bf16.mxu0 %v3080_v32 }
 0x2a4   :  { %2005 = vmatpush1.bf16.msra.mxu0 %v3078_v33  ;;  %v2630_v33 = vld [vmem:[%s3497_s8] ss:$0 sm:$0xff] }
 0x2a5   :  { %2006 = vmatprep.subr.bf16.mxu0 %v3083_v36 }
 0x2a8   :  { %2007 = vmatpush1.bf16.msra.mxu0 %v3081_v37 }
 0x2a9   :  { %2008 = vmatprep.subr.bf16.mxu0 %v3086_v39 }
 0x2ac   :  { %2009 = vmatpush1.bf16.msra.mxu0 %v3084_v40 }
 0x2ad   :  { %2010 = vmatprep.subr.bf16.mxu0 %v3089_v41 }
 0x2b0   :  { %2011 = vmatpush1.bf16.msra.mxu0 %v3087_v42 }
 0x2b1   :  { %2012 = vmatprep.subr.bf16.mxu0 %v3092_v43 }
 0x2b4   :  { %2013 = vmatpush1.bf16.msra.mxu0 %v3090_v44 }
 0x2b5   :  { %2014 = vmatprep.subr.bf16.mxu0 %v3095_v45 }
 0x2b8   :  { %2015 = vmatpush1.bf16.msra.mxu0 %v3093_v46 }
 0x2b9   :  { %2016 = vmatprep.subr.bf16.mxu0 %v3098_v47 }
 0x2bc   :  { %2017 = vmatpush1.bf16.msra.mxu0 %v3096_v48 }
 0x2bd   :  { %2018 = vmatprep.subr.bf16.mxu0 %v3101_v50 }
 0x2c0   :  { %2019 = vmatpush1.bf16.msra.mxu0 %v3099_v51 }
 0x2c1   :  { %2020 = vmatprep.subr.bf16.mxu0 %v3104_v52 }
 0x2c4   :  { %2021 = vmatpush1.bf16.msra.mxu0 %v3102_v53 }
 0x2c5   :  { %2022 = vmatprep.subr.bf16.mxu0 %v3107_v54 }
 0x2c8   :  { %2023 = vmatpush1.bf16.msra.mxu0 %v3105_v55 }
 0x2c9   :  { %2024 = vmatprep.subr.bf16.mxu0 %v3110_v56 }
 0x2cc   :  { %2025 = vmatpush1.bf16.msra.mxu0 %v3108_v57 }
 0x2cd   :  { %2026 = vmatprep.subr.bf16.mxu0 %v3113_v58 }
 0x2d0   :  { %2027 = vmatpush1.bf16.msra.mxu0 %v3111_v59 }
 0x2d1   :  { %2028 = vmatprep.subr.bf16.mxu0 %v3116_v60 }
 0x2d4   :  { %2029 = vmatpush1.bf16.msra.mxu0 %v3114_v61 }
 0x2d5   :  { %2030 = vmatprep.subr.bf16.mxu0 %v3119_v62 }
 0x2d8   :  { %2031 = vmatpush1.bf16.msra.mxu0 %v3117_v63 }
 0x2db   :  { %2033 = vmatmul.mubr.bf16.vlgmr.msra.gmra.mrb[4].mxu0 %v1561_v1 }
 0x3ae   :  { %v2034_v9 = vpop.f32.mrb[4].mxu0 }
 0x3af   :  { %v2694_v10 = vadd.f32 %v2034_v9, %v1632_v49  ;;  %v2036_v12 = vpop.f32.mrb[5].mxu0 }
 0x3b0   :  { %v2695_v13 = vadd.f32 %v2036_v12, %v1636_v8  ;;  %v2038_v14 = vpop.f32.mrb[6].mxu0 }
 0x3b1   :  { %v2041_v15 = vmax.f32 %v2694_v10, 0.0  ;;  %v2039_v16 = vpop.f32.mrb[7].mxu0 }
 0x3b2   :  { %v2042_v17 = vmax.f32 %v2695_v13, 0.0 }
 0x3b3   :  { %v2043_v19 = vpack.c.bf16 %v2041_v15, %v2041_v15 }
 0x3b4   :  { %v2044_v11 = vpack.c.bf16 %v2042_v17, %v2042_v17 }
 0x3b6   :  { %2212 = vmatprep.mubr.bf16.mxu1 %v2044_v11 }
 0x3b7   :  { %2213 = vmatmul.mubr.bf16.vlgmr.msra.gmra.mrb[4].mxu1 %v2043_v19 }
 0x3b8   :  { %2671 = vmatpush3.bf16.msra.mxu1 %v3136_v18  ;;  %2686 = vmatprep.mubr.msk.bf16.mxu1 %vm3298_vm0, %v3297_v6 }
 0x3b9   :  { %2672 = vmatprep.subr.bf16.mxu1 %v3297_v6 }
 0x3bc   :  { %2673 = vmatpush3.bf16.msra.mxu1 %v3137_v20 }
 0x3bd   :  { %2674 = vmatprep.subr.bf16.mxu1 %v3297_v6 }
 0x3c0   :  { %2675 = vmatpush3.bf16.msra.mxu1 %v3138_v35 }
 0x3c1   :  { %2676 = vmatprep.subr.bf16.mxu1 %v3297_v6 }
 0x3c4   :  { %2677 = vmatpush3.bf16.msra.mxu1 %v3139_v34 }
 0x3c5   :  { %2678 = vmatprep.subr.bf16.mxu1 %v3297_v6 }
 0x3c8   :  { %2679 = vmatpush3.bf16.msra.mxu1 %v3140_v38 }
 0x3c9   :  { %2680 = vmatprep.subr.bf16.mxu1 %v3297_v6 }
 0x3cc   :  { %2681 = vmatpush3.bf16.msra.mxu1 %v3141_v21 }
 0x3cd   :  { %2682 = vmatprep.subr.bf16.mxu1 %v3297_v6 }
 0x3d0   :  { %2683 = vmatpush3.bf16.msra.mxu1 %v3142_v22 }
 0x3d1   :  { %2684 = vmatprep.subr.bf16.mxu1 %v3297_v6 }
 0x3d4   :  { %2685 = vmatpush3.bf16.msra.mxu1 %v3143_v23 }
 0x48a   :  { %v2655_v24 = vpop.f32.mrb[4].mxu1 }
 0x48b   :  { %v2656_v26 = vpop.f32.mrb[5].mxu1 }
 0x48c   :  { %v2657_v27 = vadd.f32 %v2656_v26, %v2655_v24  ;;  %v2658_v28 = vpop.f32.mrb[6].mxu1 }
 0x48d   :  { %v2659_v29 = vpop.f32.mrb[7].mxu1 }
 0x48e   :  { %v2215_v30 = vadd.f32 %v2657_v27, %v2613_v25 }
 0x490   :  { %v2220_v31 = vmax.f32 %v2215_v30, 0.0 }
 0x492   :  { %v2221_v32 = vpack.c.bf16 %v2220_v31, %v2220_v31 }
 0x494   :  { %2687 = vmatmul.mubr.bf16.vlgmr.msra.gmra.mrb[8].mxu1 %v2221_v32 }
 0x567   :  { %v2327_v36 = vpop.f32.mrb[8].mxu1 }
 0x568   :  { %v2328_v37 = vadd.f32 %v2630_v33, %v2327_v36  ;;  %v2688_v39 = vpop.f32.mrb[9].mxu1 }
 0x569   :  { %v2330_v40 = vpop.f32.mrb[10].mxu1 }
 0x56a   :  { %2333 = vst [vmem:[#allocation11] sm:$0xff] %v2328_v37  ;;  %v2689_v41 = vpop.f32.mrb[11].mxu1 }
 0x56b   :  { %3267 = shalt.err (!%p3264_p2)
}
 0x56c   :  { %s3268_s8 = scalar_lea.hbm %s3498_s9, 128 }
 0x56d   :  { %p3269_p3 = scmp.ne.s32.totalorder %s3498_s9, %s3268_s8  ;;  %p3272_p4 = scmp.lt.u32.totalorder %s3268_s8, %s3498_s9 }
 0x56f   :  { %p3274_p5 = pnand %p3272_p4, %p3269_p3 }
 0x571   :  { %3277 = shalt.err (!%p3274_p5)
}
 0x572   :  { %2343 = dma.vmem_to_hbm [thread:$0]  %s2341_s13, 128, %s3498_s9, [#allocation4]  }
 0x573   :  { %3284 = dma.done.wait [#allocation4], 128  }
 0x574   :  { %3285 = vsyncadd [#allocation4], 4294967168 }
 0x575   :  { %2347 = vsyncpa [#allocation3], 1 }
 0x576   :  { %2348 = vsyncpa [#allocation6], 1 }
 0x577   :  { %2349 = vsyncpa [#allocation9], 1 }
 0x578   :  { %2350 = vsyncpa [#allocation4], 1 }

</bundles_post_ra>
